<compile_context>
chip_gen: v7x
topology: tpu7x:2x2x1
jax: 0.10.0
libtpu: 0.0.40
codegen_flags: <defaults>
</compile_context>

<pallas_src>
import functools

import jax
import jax.numpy as jnp
from jax.experimental import pallas as pl
from jax.experimental.pallas import tpu as pltpu


# ----------------------------------------------------------------------------
# Fused linear kernel (optionally fused element-wise add, e.g. pos-embed)
# ----------------------------------------------------------------------------

def _linear_kernel(*refs, has_add):
    if has_add:
        x_ref, w_ref, b_ref, add_ref, o_ref = refs
    else:
        x_ref, w_ref, b_ref, o_ref = refs
    x = x_ref[0].astype(jnp.float32)                      # (T, K)
    w = w_ref[...].astype(jnp.float32)                    # (K, N)
    y = jnp.dot(x, w, preferred_element_type=jnp.float32) + b_ref[...].astype(jnp.float32)
    if has_add:
        y = y + add_ref[0].astype(jnp.float32)
    o_ref[0] = y.astype(o_ref.dtype)


def linear3d(x, w, b, add=None):
    """y[b] = x[b] @ w + b (+ add[b]).  x: (B, T, K) -> (B, T, N).

    One grid step per batch element; batch axis is 'parallel' so v7x's second
    TensorCore picks up half the work.
    """
    B, T, K = x.shape
    N = w.shape[1]
    has_add = add is not None
    in_specs = [
        pl.BlockSpec((1, T, K), lambda i: (i, 0, 0)),
        pl.BlockSpec((K, N), lambda i: (0, 0)),
        pl.BlockSpec((1, N), lambda i: (0, 0)),
    ]
    args = [x, w, b.reshape(1, N)]
    if has_add:
        in_specs.append(pl.BlockSpec((1, T, N), lambda i: (i, 0, 0)))
        args.append(add)
    return pl.pallas_call(
        functools.partial(_linear_kernel, has_add=has_add),
        out_shape=jax.ShapeDtypeStruct((B, T, N), jnp.float32),
        grid=(B,),
        in_specs=in_specs,
        out_specs=pl.BlockSpec((1, T, N), lambda i: (i, 0, 0)),
        compiler_params=pltpu.CompilerParams(dimension_semantics=("parallel",)),
    )(*args)


# ----------------------------------------------------------------------------
# Fully fused transformer stack kernel
#   grid = (batch, depth); token state carried in VMEM scratch across depth.
# ----------------------------------------------------------------------------

def _transformer_stack_kernel(
    x_ref,
    ln1_g_ref, ln1_b_ref, qkv_w_ref, qkv_b_ref, proj_w_ref, proj_b_ref,
    ln2_g_ref, ln2_b_ref, fc1_w_ref, fc1_b_ref, fc2_w_ref, fc2_b_ref,
    o_ref,
    x_sc,
    *, num_heads, dim_per_head):
    layer = pl.program_id(1)
    n_layers = pl.num_programs(1)

    # Load the batch element's tokens into the VMEM carry on the first layer.
    @pl.when(layer == 0)
    def _():
        x_sc[...] = x_ref[0].astype(jnp.float32)

    x = x_sc[...]                                          # (S, D) f32

    def _ln(v, g, b):
        mu = jnp.mean(v, axis=-1, keepdims=True)
        var = jnp.mean(jnp.square(v - mu), axis=-1, keepdims=True)
        return (v - mu) * jax.lax.rsqrt(var + 1e-5) * g + b

    inner = num_heads * dim_per_head
    scale = 1.0 / (dim_per_head ** 0.5)

    # --- multi-head self-attention (pre-norm) ---
    h = _ln(x, ln1_g_ref[0].astype(jnp.float32), ln1_b_ref[0].astype(jnp.float32))
    qkv = jnp.dot(h, qkv_w_ref[0].astype(jnp.float32),
                  preferred_element_type=jnp.float32) + qkv_b_ref[0].astype(jnp.float32)

    head_outs = []
    for hd in range(num_heads):                            # static unroll (tiny H)
        q = qkv[:, hd * dim_per_head:(hd + 1) * dim_per_head]
        k = qkv[:, inner + hd * dim_per_head: inner + (hd + 1) * dim_per_head]
        v = qkv[:, 2 * inner + hd * dim_per_head: 2 * inner + (hd + 1) * dim_per_head]
        # q @ k^T without an explicit transpose (contract last dims).
        s = jax.lax.dot_general(q, k, (((1,), (1,)), ((), ())),
                                preferred_element_type=jnp.float32) * scale
        s = s - jnp.max(s, axis=-1, keepdims=True)
        p = jnp.exp(s)
        p = p * pl.reciprocal(jnp.sum(p, axis=-1, keepdims=True), approx=True)
        head_outs.append(jnp.dot(p, v, preferred_element_type=jnp.float32))
    attn = jnp.concatenate(head_outs, axis=-1)             # (S, inner)

    x = x + jnp.dot(attn, proj_w_ref[0].astype(jnp.float32),
                    preferred_element_type=jnp.float32) + proj_b_ref[0].astype(jnp.float32)

    # --- MLP (pre-norm) ---
    h = _ln(x, ln2_g_ref[0].astype(jnp.float32), ln2_b_ref[0].astype(jnp.float32))
    h = jnp.dot(h, fc1_w_ref[0].astype(jnp.float32),
                preferred_element_type=jnp.float32) + fc1_b_ref[0].astype(jnp.float32)
    # TODO(synk): reference Transformer internals not given; jax.nn.gelu (tanh
    # approximation) is used here -- PyTorch nn.GELU defaults to exact erf.
    h = jax.nn.gelu(h)
    x = x + jnp.dot(h, fc2_w_ref[0].astype(jnp.float32),
                    preferred_element_type=jnp.float32) + fc2_b_ref[0].astype(jnp.float32)

    x_sc[...] = x

    @pl.when(layer == n_layers - 1)
    def _():
        o_ref[0] = x.astype(o_ref.dtype)


def transformer_stack(x, p, num_heads, dim_per_head):
    """Run `depth` pre-norm ViT blocks fused in one pallas_call.

    x: (B, S, D); p: dict of depth-stacked parameters (leading axis = depth).
    """
    B, S, D = x.shape
    depth = p["qkv_w"].shape[0]
    inner = num_heads * dim_per_head
    mlp = p["fc1_w"].shape[-1]

    def wmap(b, d):      # per-layer weight blocks
        return (d, 0, 0)

    def xmap(b, d):      # per-batch token block (resident across depth)
        return (b, 0, 0)

    in_specs = [
        pl.BlockSpec((1, S, D), xmap),                 # x
        pl.BlockSpec((1, 1, D), wmap),                 # ln1_g
        pl.BlockSpec((1, 1, D), wmap),                 # ln1_b
        pl.BlockSpec((1, D, 3 * inner), wmap),         # qkv_w
        pl.BlockSpec((1, 1, 3 * inner), wmap),         # qkv_b
        pl.BlockSpec((1, inner, D), wmap),             # proj_w
        pl.BlockSpec((1, 1, D), wmap),                 # proj_b
        pl.BlockSpec((1, 1, D), wmap),                 # ln2_g
        pl.BlockSpec((1, 1, D), wmap),                 # ln2_b
        pl.BlockSpec((1, D, mlp), wmap),               # fc1_w
        pl.BlockSpec((1, 1, mlp), wmap),               # fc1_b
        pl.BlockSpec((1, mlp, D), wmap),               # fc2_w
        pl.BlockSpec((1, 1, D), wmap),                 # fc2_b
    ]
    return pl.pallas_call(
        functools.partial(_transformer_stack_kernel,
                          num_heads=num_heads, dim_per_head=dim_per_head),
        out_shape=jax.ShapeDtypeStruct((B, S, D), jnp.float32),
        grid=(B, depth),
        in_specs=in_specs,
        out_specs=pl.BlockSpec((1, S, D), xmap),
        scratch_shapes=[pltpu.VMEM((S, D), jnp.float32)],
        compiler_params=pltpu.CompilerParams(
            dimension_semantics=("parallel", "arbitrary")),
    )(x, p["ln1_g"], p["ln1_b"], p["qkv_w"], p["qkv_b"], p["proj_w"], p["proj_b"],
      p["ln2_g"], p["ln2_b"], p["fc1_w"], p["fc1_b"], p["fc2_w"], p["fc2_b"])


# ----------------------------------------------------------------------------
# Parameters
# ----------------------------------------------------------------------------

def init_block_stack(key, depth, dim, num_heads, dim_per_head, mlp_dim, scale=0.02):
    """Depth-stacked pre-norm ViT block parameters (leading axis = depth)."""
    inner = num_heads * dim_per_head
    ks = jax.random.split(key, 4)
    f32 = jnp.float32
    return dict(
        ln1_g=jnp.ones((depth, 1, dim), f32), ln1_b=jnp.zeros((depth, 1, dim), f32),
        qkv_w=scale * jax.random.normal(ks[0], (depth, dim, 3 * inner), f32),
        qkv_b=jnp.zeros((depth, 1, 3 * inner), f32),
        proj_w=scale * jax.random.normal(ks[1], (depth, inner, dim), f32),
        proj_b=jnp.zeros((depth, 1, dim), f32),
        ln2_g=jnp.ones((depth, 1, dim), f32), ln2_b=jnp.zeros((depth, 1, dim), f32),
        fc1_w=scale * jax.random.normal(ks[2], (depth, dim, mlp_dim), f32),
        fc1_b=jnp.zeros((depth, 1, mlp_dim), f32),
        fc2_w=scale * jax.random.normal(ks[3], (depth, mlp_dim, dim), f32),
        fc2_b=jnp.zeros((depth, 1, dim), f32),
    )


def init_mae_params(key, cfg):
    f32 = jnp.float32
    scale = 0.02
    keys = jax.random.split(key, 10)
    ki = iter(keys)
    params = dict(
        # MAE patch_embed: Linear(patch_dim, encoder_dim)
        patch_embed_w=scale * jax.random.normal(next(ki), (cfg["patch_dim"], cfg["encoder_dim"]), f32),
        patch_embed_b=jnp.zeros((cfg["encoder_dim"],), f32),
        # encoder.pos_embed: (1, num_patches + 1, encoder_dim)
        enc_pos_embed=scale * jax.random.normal(next(ki), (1, cfg["num_patches"] + 1, cfg["encoder_dim"]), f32),
        # enc_to_dec: Linear(encoder_dim, decoder_dim)
        enc_to_dec_w=scale * jax.random.normal(next(ki), (cfg["encoder_dim"], cfg["decoder_dim"]), f32),
        enc_to_dec_b=jnp.zeros((cfg["decoder_dim"],), f32),
        # mask_embed: Parameter(randn(decoder_dim))
        mask_embed=jax.random.normal(next(ki), (cfg["decoder_dim"],), f32),
        # decoder_pos_embed: Embedding(num_patches, decoder_dim)
        dec_pos_embed=scale * jax.random.normal(next(ki), (cfg["num_patches"], cfg["decoder_dim"]), f32),
        # head: Linear(decoder_dim, num_pixels_per_patch = encoder_dim)
        head_w=scale * jax.random.normal(next(ki), (cfg["decoder_dim"], cfg["encoder_dim"]), f32),
        head_b=jnp.zeros((cfg["encoder_dim"],), f32),
    )
    params["encoder_blocks"] = init_block_stack(
        next(ki), cfg["encoder_depth"], cfg["encoder_dim"], cfg["encoder_heads"],
        cfg["encoder_dph"], 4 * cfg["encoder_dim"], scale)
    params["decoder_blocks"] = init_block_stack(
        next(ki), cfg["decoder_depth"], cfg["decoder_dim"], cfg["decoder_heads"],
        cfg["decoder_dph"], 4 * cfg["decoder_dim"], scale)
    return params


# ----------------------------------------------------------------------------
# MAE forward pass (mirrors the PyTorch MAE.forward)
# ----------------------------------------------------------------------------

def mae_forward(params, x, shuffle_key, cfg):
    B, C, H, W = x.shape
    ph, pw = cfg["patch_h"], cfg["patch_w"]
    num_patches = (H // ph) * (W // pw)

    # i. Patch partition -> (B, num_patches, ph*pw*C) with (ph, pw, c) ordering
    patches = x.reshape(B, C, H // ph, ph, W // pw, pw)
    patches = patches.transpose(0, 2, 4, 3, 5, 1).reshape(B, num_patches, -1)

    # ii. Divide into masked & un-masked groups
    # TODO(synk): at real MAE sizes, move these gathers/scatters into the Pallas
    # pipeline via PrefetchScalarGridSpec row gathers; at toy sizes plain-JAX
    # indexing is cheaper than extra kernel launches.
    num_masked = int(cfg["mask_ratio"] * num_patches)
    shuffle_indices = jnp.argsort(
        jax.random.uniform(shuffle_key, (B, num_patches)), axis=-1)
    mask_ind = shuffle_indices[:, :num_masked]
    unmask_ind = shuffle_indices[:, num_masked:]
    batch_ind = jnp.arange(B)[:, None]
    mask_patches = patches[batch_ind, mask_ind]
    unmask_patches = patches[batch_ind, unmask_ind]

    # iii. Encode (patch_embed + pos-embed add fused in one kernel)
    pos = params["enc_pos_embed"][0][unmask_ind + 1]                 # (B, Su, D)
    unmask_tokens = linear3d(unmask_patches, params["patch_embed_w"],
                             params["patch_embed_b"], add=pos)
    enc = transformer_stack(unmask_tokens, params["encoder_blocks"],
                            cfg["encoder_heads"], cfg["encoder_dph"])

    # iv. Decode
    enc_to_dec_tokens = linear3d(enc, params["enc_to_dec_w"], params["enc_to_dec_b"])
    mask_tokens = jnp.broadcast_to(
        params["mask_embed"][None, None, :], (B, num_masked, cfg["decoder_dim"]))
    mask_tokens = mask_tokens + params["dec_pos_embed"][mask_ind]
    concat_tokens = jnp.concatenate([mask_tokens, enc_to_dec_tokens], axis=1)
    # dec_input[b, shuffle_indices[b]] = concat_tokens[b]
    dec_input = jnp.zeros_like(concat_tokens).at[batch_ind, shuffle_indices].set(concat_tokens)
    dec = transformer_stack(dec_input, params["decoder_blocks"],
                            cfg["decoder_heads"], cfg["decoder_dph"])

    # v. Mask pixel prediction (head maps to encoder_dim, as in the reference)
    dec_mask_tokens = dec[batch_ind, mask_ind]
    pred_mask_pixel_values = linear3d(dec_mask_tokens, params["head_w"], params["head_b"])
    return pred_mask_pixel_values, mask_patches


# ----------------------------------------------------------------------------
# main
# ----------------------------------------------------------------------------

if __name__ == "__main__":
    cfg = dict(
        patch_h=4, patch_w=4,
        mask_ratio=0.75,
        encoder_dim=32, encoder_depth=2, encoder_heads=4, encoder_dph=8,
        decoder_dim=64, decoder_depth=1, decoder_heads=2, decoder_dph=16,
    )
    B, C, H, W = 2, 3, 16, 16          # channels fixed to 3 (patch_dim uses 3)
    cfg["num_patches"] = (H // cfg["patch_h"]) * (W // cfg["patch_w"])
    cfg["patch_dim"] = 3 * cfg["patch_h"] * cfg["patch_w"]

    key = jax.random.PRNGKey(0)
    k_x, k_shuffle, k_params = jax.random.split(key, 3)

    x = jax.random.normal(k_x, (B, C, H, W), jnp.float32)
    params = init_mae_params(k_params, cfg)

    fwd = jax.jit(functools.partial(mae_forward, cfg=cfg))
    pred, mask_patches = fwd(params, x, k_shuffle)
    (pred, mask_patches) = jax.block_until_ready((pred, mask_patches))

    num_masked = int(cfg["mask_ratio"] * cfg["num_patches"])
    assert pred.shape == (B, num_masked, cfg["encoder_dim"]), pred.shape
    assert mask_patches.shape == (B, num_masked, cfg["patch_dim"]), mask_patches.shape
    assert jnp.all(jnp.isfinite(pred)) and jnp.all(jnp.isfinite(mask_patches))
    print("KERNEL_OK")
</pallas_src>

<mosaic_0001>
module attributes {stable_mosaic.version = 11 : i64} {
  func.func @_transformer_stack_kernel(%arg0: i32, %arg1: i32, %arg2: memref<1x4x32xf32, #tpu.memory_space<vmem>>, %arg3: memref<1x1x32xf32, #tpu.memory_space<vmem>>, %arg4: memref<1x1x32xf32, #tpu.memory_space<vmem>>, %arg5: memref<1x32x96xf32, #tpu.memory_space<vmem>>, %arg6: memref<1x1x96xf32, #tpu.memory_space<vmem>>, %arg7: memref<1x32x32xf32, #tpu.memory_space<vmem>>, %arg8: memref<1x1x32xf32, #tpu.memory_space<vmem>>, %arg9: memref<1x1x32xf32, #tpu.memory_space<vmem>>, %arg10: memref<1x1x32xf32, #tpu.memory_space<vmem>>, %arg11: memref<1x32x128xf32, #tpu.memory_space<vmem>>, %arg12: memref<1x1x128xf32, #tpu.memory_space<vmem>>, %arg13: memref<1x128x32xf32, #tpu.memory_space<vmem>>, %arg14: memref<1x1x32xf32, #tpu.memory_space<vmem>>, %arg15: memref<1x4x32xf32, #tpu.memory_space<vmem>>, %arg16: memref<4x32xf32, #tpu.memory_space<vmem>>) attributes {dimension_semantics = [#tpu.dimension_semantics<parallel>, #tpu.dimension_semantics<arbitrary>], iteration_bounds = array<i64: 2, 2>, scalar_prefetch = 0 : i64, scratch_operands = 1 : i64, tpu.core_type = #tpu.core_type<tc>, window_params = [{transform_indices = @transform_0, window_bounds = array<i64: 1, 4, 32>}, {transform_indices = @transform_1, window_bounds = array<i64: 1, 1, 32>}, {transform_indices = @transform_2, window_bounds = array<i64: 1, 1, 32>}, {transform_indices = @transform_3, window_bounds = array<i64: 1, 32, 96>}, {transform_indices = @transform_4, window_bounds = array<i64: 1, 1, 96>}, {transform_indices = @transform_5, window_bounds = array<i64: 1, 32, 32>}, {transform_indices = @transform_6, window_bounds = array<i64: 1, 1, 32>}, {transform_indices = @transform_7, window_bounds = array<i64: 1, 1, 32>}, {transform_indices = @transform_8, window_bounds = array<i64: 1, 1, 32>}, {transform_indices = @transform_9, window_bounds = array<i64: 1, 32, 128>}, {transform_indices = @transform_10, window_bounds = array<i64: 1, 1, 128>}, {transform_indices = @transform_11, window_bounds = array<i64: 1, 128, 32>}, {transform_indices = @transform_12, window_bounds = array<i64: 1, 1, 32>}, {transform_indices = @transform_13, window_bounds = array<i64: 1, 4, 32>}]} {
    %c0_i32 = arith.constant 0 : i32
    %0 = arith.cmpi eq, %arg1, %c0_i32 : i32
    %1 = arith.extui %0 : i1 to i32
    %c0_i32_0 = arith.constant 0 : i32
    %2 = arith.cmpi ne, %1, %c0_i32_0 : i32
    scf.if %2 {
      %c0_78 = arith.constant 0 : index
      %c0_79 = arith.constant 0 : index
      %c0_80 = arith.constant 0 : index
      %172 = vector.load %arg2[%c0_78, %c0_79, %c0_80] : memref<1x4x32xf32, #tpu.memory_space<vmem>>, vector<1x4x32xf32>
      %173 = vector.shape_cast %172 : vector<1x4x32xf32> to vector<4x32xf32>
      %c0_81 = arith.constant 0 : index
      %c0_82 = arith.constant 0 : index
      %174 = vector.load %arg16[%c0_81, %c0_82] : memref<4x32xf32, #tpu.memory_space<vmem>>, vector<4x32xf32>
      tpu.vector_store %arg16[%c0_81, %c0_82], %173 {strides = array<i32>} : memref<4x32xf32, #tpu.memory_space<vmem>>, vector<4x32xf32>,
    } else {
    }
    %c0 = arith.constant 0 : index
    %c0_1 = arith.constant 0 : index
    %3 = vector.load %arg16[%c0, %c0_1] : memref<4x32xf32, #tpu.memory_space<vmem>>, vector<4x32xf32>
    %c0_2 = arith.constant 0 : index
    %c0_3 = arith.constant 0 : index
    %c0_4 = arith.constant 0 : index
    %4 = vector.load %arg3[%c0_2, %c0_3, %c0_4] : memref<1x1x32xf32, #tpu.memory_space<vmem>>, vector<1x1x32xf32>
    %5 = vector.shape_cast %4 : vector<1x1x32xf32> to vector<1x32xf32>
    %c0_5 = arith.constant 0 : index
    %c0_6 = arith.constant 0 : index
    %c0_7 = arith.constant 0 : index
    %6 = vector.load %arg4[%c0_5, %c0_6, %c0_7] : memref<1x1x32xf32, #tpu.memory_space<vmem>>, vector<1x1x32xf32>
    %7 = vector.shape_cast %6 : vector<1x1x32xf32> to vector<1x32xf32>
    %cst = arith.constant dense<0.000000e+00> : vector<4xf32>
    %8 = vector.multi_reduction <add>, %3, %cst [1] : vector<4x32xf32> to vector<4xf32>
    %9 = vector.shape_cast %8 : vector<4xf32> to vector<4x1xf32>
    %cst_8 = arith.constant 3.200000e+01 : f32
    %10 = vector.broadcast %cst_8 : f32 to vector<4x1xf32>
    %11 = arith.divf %9, %10 : vector<4x1xf32>
    %12 = vector.broadcast %11 : vector<4x1xf32> to vector<4x32xf32>
    %13 = arith.subf %3, %12 : vector<4x32xf32>
    %14 = arith.mulf %13, %13 : vector<4x32xf32>
    %cst_9 = arith.constant dense<0.000000e+00> : vector<4xf32>
    %15 = vector.multi_reduction <add>, %14, %cst_9 [1] : vector<4x32xf32> to vector<4xf32>
    %16 = vector.shape_cast %15 : vector<4xf32> to vector<4x1xf32>
    %cst_10 = arith.constant 3.200000e+01 : f32
    %17 = vector.broadcast %cst_10 : f32 to vector<4x1xf32>
    %18 = arith.divf %16, %17 : vector<4x1xf32>
    %19 = vector.broadcast %11 : vector<4x1xf32> to vector<4x32xf32>
    %20 = arith.subf %3, %19 : vector<4x32xf32>
    %cst_11 = arith.constant 9.99999974E-6 : f32
    %21 = vector.broadcast %cst_11 : f32 to vector<4x1xf32>
    %22 = arith.addf %18, %21 : vector<4x1xf32>
    %23 = math.rsqrt %22 : vector<4x1xf32>
    %24 = vector.broadcast %23 : vector<4x1xf32> to vector<4x32xf32>
    %25 = arith.mulf %20, %24 : vector<4x32xf32>
    %26 = vector.broadcast %5 : vector<1x32xf32> to vector<4x32xf32>
    %27 = arith.mulf %25, %26 : vector<4x32xf32>
    %28 = vector.broadcast %7 : vector<1x32xf32> to vector<4x32xf32>
    %29 = arith.addf %27, %28 : vector<4x32xf32>
    %c0_12 = arith.constant 0 : index
    %c0_13 = arith.constant 0 : index
    %c0_14 = arith.constant 0 : index
    %30 = vector.load %arg5[%c0_12, %c0_13, %c0_14] : memref<1x32x96xf32, #tpu.memory_space<vmem>>, vector<1x32x96xf32>
    %31 = vector.shape_cast %30 : vector<1x32x96xf32> to vector<32x96xf32>
    %cst_15 = arith.constant dense<0.000000e+00> : vector<4x96xf32>
    %32 = tpu.matmul %29, %31, %cst_15 {dimension_numbers = #tpu.dot_dimension_numbers<[1], [0], [0], [1], [0, 0, 1, 1], [], []>} : vector<4x32xf32>, vector<32x96xf32>, vector<4x96xf32> -> vector<4x96xf32>
    %c0_16 = arith.constant 0 : index
    %c0_17 = arith.constant 0 : index
    %c0_18 = arith.constant 0 : index
    %33 = vector.load %arg6[%c0_16, %c0_17, %c0_18] : memref<1x1x96xf32, #tpu.memory_space<vmem>>, vector<1x1x96xf32>
    %34 = vector.shape_cast %33 : vector<1x1x96xf32> to vector<1x96xf32>
    %35 = vector.broadcast %34 : vector<1x96xf32> to vector<4x96xf32>
    %36 = arith.addf %32, %35 : vector<4x96xf32>
    %37 = vector.extract_strided_slice %36 {offsets = [0, 0], sizes = [4, 8], strides = [1, 1]} : vector<4x96xf32> to vector<4x8xf32>
    %38 = vector.extract_strided_slice %36 {offsets = [0, 32], sizes = [4, 8], strides = [1, 1]} : vector<4x96xf32> to vector<4x8xf32>
    %39 = vector.extract_strided_slice %36 {offsets = [0, 64], sizes = [4, 8], strides = [1, 1]} : vector<4x96xf32> to vector<4x8xf32>
    %cst_19 = arith.constant dense<0.000000e+00> : vector<4x4xf32>
    %40 = tpu.matmul %37, %38, %cst_19 {dimension_numbers = #tpu.dot_dimension_numbers<[1], [1], [0], [0], [0, 0, 1, 0], [], []>} : vector<4x8xf32>, vector<4x8xf32>, vector<4x4xf32> -> vector<4x4xf32>
    %cst_20 = arith.constant 0.353553385 : f32
    %41 = vector.broadcast %cst_20 : f32 to vector<4x4xf32>
    %42 = arith.mulf %40, %41 : vector<4x4xf32>
    %cst_21 = arith.constant dense<0xFF800000> : vector<4xf32>
    %43 = vector.multi_reduction <maximumf>, %42, %cst_21 [1] : vector<4x4xf32> to vector<4xf32>
    %44 = vector.shape_cast %43 : vector<4xf32> to vector<4x1xf32>
    %45 = vector.broadcast %44 : vector<4x1xf32> to vector<4x4xf32>
    %46 = arith.subf %42, %45 : vector<4x4xf32>
    %47 = math.exp %46 : vector<4x4xf32>
    %cst_22 = arith.constant dense<0.000000e+00> : vector<4xf32>
    %48 = vector.multi_reduction <add>, %47, %cst_22 [1] : vector<4x4xf32> to vector<4xf32>
    %49 = vector.shape_cast %48 : vector<4xf32> to vector<4x1xf32>
    %50 = tpu.reciprocal %49 {approx = true} : vector<4x1xf32> -> vector<4x1xf32>
    %51 = vector.broadcast %50 : vector<4x1xf32> to vector<4x4xf32>
    %52 = arith.mulf %47, %51 : vector<4x4xf32>
    %cst_23 = arith.constant dense<0.000000e+00> : vector<4x8xf32>
    %53 = tpu.matmul %52, %39, %cst_23 {dimension_numbers = #tpu.dot_dimension_numbers<[1], [0], [0], [1], [0, 0, 1, 1], [], []>} : vector<4x4xf32>, vector<4x8xf32>, vector<4x8xf32> -> vector<4x8xf32>
    %54 = vector.extract_strided_slice %36 {offsets = [0, 8], sizes = [4, 8], strides = [1, 1]} : vector<4x96xf32> to vector<4x8xf32>
    %55 = vector.extract_strided_slice %36 {offsets = [0, 40], sizes = [4, 8], strides = [1, 1]} : vector<4x96xf32> to vector<4x8xf32>
    %56 = vector.extract_strided_slice %36 {offsets = [0, 72], sizes = [4, 8], strides = [1, 1]} : vector<4x96xf32> to vector<4x8xf32>
    %cst_24 = arith.constant dense<0.000000e+00> : vector<4x4xf32>
    %57 = tpu.matmul %54, %55, %cst_24 {dimension_numbers = #tpu.dot_dimension_numbers<[1], [1], [0], [0], [0, 0, 1, 0], [], []>} : vector<4x8xf32>, vector<4x8xf32>, vector<4x4xf32> -> vector<4x4xf32>
    %cst_25 = arith.constant 0.353553385 : f32
    %58 = vector.broadcast %cst_25 : f32 to vector<4x4xf32>
    %59 = arith.mulf %57, %58 : vector<4x4xf32>
    %cst_26 = arith.constant dense<0xFF800000> : vector<4xf32>
    %60 = vector.multi_reduction <maximumf>, %59, %cst_26 [1] : vector<4x4xf32> to vector<4xf32>
    %61 = vector.shape_cast %60 : vector<4xf32> to vector<4x1xf32>
    %62 = vector.broadcast %61 : vector<4x1xf32> to vector<4x4xf32>
    %63 = arith.subf %59, %62 : vector<4x4xf32>
    %64 = math.exp %63 : vector<4x4xf32>
    %cst_27 = arith.constant dense<0.000000e+00> : vector<4xf32>
    %65 = vector.multi_reduction <add>, %64, %cst_27 [1] : vector<4x4xf32> to vector<4xf32>
    %66 = vector.shape_cast %65 : vector<4xf32> to vector<4x1xf32>
    %67 = tpu.reciprocal %66 {approx = true} : vector<4x1xf32> -> vector<4x1xf32>
    %68 = vector.broadcast %67 : vector<4x1xf32> to vector<4x4xf32>
    %69 = arith.mulf %64, %68 : vector<4x4xf32>
    %cst_28 = arith.constant dense<0.000000e+00> : vector<4x8xf32>
    %70 = tpu.matmul %69, %56, %cst_28 {dimension_numbers = #tpu.dot_dimension_numbers<[1], [0], [0], [1], [0, 0, 1, 1], [], []>} : vector<4x4xf32>, vector<4x8xf32>, vector<4x8xf32> -> vector<4x8xf32>
    %71 = vector.extract_strided_slice %36 {offsets = [0, 16], sizes = [4, 8], strides = [1, 1]} : vector<4x96xf32> to vector<4x8xf32>
    %72 = vector.extract_strided_slice %36 {offsets = [0, 48], sizes = [4, 8], strides = [1, 1]} : vector<4x96xf32> to vector<4x8xf32>
    %73 = vector.extract_strided_slice %36 {offsets = [0, 80], sizes = [4, 8], strides = [1, 1]} : vector<4x96xf32> to vector<4x8xf32>
    %cst_29 = arith.constant dense<0.000000e+00> : vector<4x4xf32>
    %74 = tpu.matmul %71, %72, %cst_29 {dimension_numbers = #tpu.dot_dimension_numbers<[1], [1], [0], [0], [0, 0, 1, 0], [], []>} : vector<4x8xf32>, vector<4x8xf32>, vector<4x4xf32> -> vector<4x4xf32>
    %cst_30 = arith.constant 0.353553385 : f32
    %75 = vector.broadcast %cst_30 : f32 to vector<4x4xf32>
    %76 = arith.mulf %74, %75 : vector<4x4xf32>
    %cst_31 = arith.constant dense<0xFF800000> : vector<4xf32>
    %77 = vector.multi_reduction <maximumf>, %76, %cst_31 [1] : vector<4x4xf32> to vector<4xf32>
    %78 = vector.shape_cast %77 : vector<4xf32> to vector<4x1xf32>
    %79 = vector.broadcast %78 : vector<4x1xf32> to vector<4x4xf32>
    %80 = arith.subf %76, %79 : vector<4x4xf32>
    %81 = math.exp %80 : vector<4x4xf32>
    %cst_32 = arith.constant dense<0.000000e+00> : vector<4xf32>
    %82 = vector.multi_reduction <add>, %81, %cst_32 [1] : vector<4x4xf32> to vector<4xf32>
    %83 = vector.shape_cast %82 : vector<4xf32> to vector<4x1xf32>
    %84 = tpu.reciprocal %83 {approx = true} : vector<4x1xf32> -> vector<4x1xf32>
    %85 = vector.broadcast %84 : vector<4x1xf32> to vector<4x4xf32>
    %86 = arith.mulf %81, %85 : vector<4x4xf32>
    %cst_33 = arith.constant dense<0.000000e+00> : vector<4x8xf32>
    %87 = tpu.matmul %86, %73, %cst_33 {dimension_numbers = #tpu.dot_dimension_numbers<[1], [0], [0], [1], [0, 0, 1, 1], [], []>} : vector<4x4xf32>, vector<4x8xf32>, vector<4x8xf32> -> vector<4x8xf32>
    %88 = vector.extract_strided_slice %36 {offsets = [0, 24], sizes = [4, 8], strides = [1, 1]} : vector<4x96xf32> to vector<4x8xf32>
    %89 = vector.extract_strided_slice %36 {offsets = [0, 56], sizes = [4, 8], strides = [1, 1]} : vector<4x96xf32> to vector<4x8xf32>
    %90 = vector.extract_strided_slice %36 {offsets = [0, 88], sizes = [4, 8], strides = [1, 1]} : vector<4x96xf32> to vector<4x8xf32>
    %cst_34 = arith.constant dense<0.000000e+00> : vector<4x4xf32>
    %91 = tpu.matmul %88, %89, %cst_34 {dimension_numbers = #tpu.dot_dimension_numbers<[1], [1], [0], [0], [0, 0, 1, 0], [], []>} : vector<4x8xf32>, vector<4x8xf32>, vector<4x4xf32> -> vector<4x4xf32>
    %cst_35 = arith.constant 0.353553385 : f32
    %92 = vector.broadcast %cst_35 : f32 to vector<4x4xf32>
    %93 = arith.mulf %91, %92 : vector<4x4xf32>
    %cst_36 = arith.constant dense<0xFF800000> : vector<4xf32>
    %94 = vector.multi_reduction <maximumf>, %93, %cst_36 [1] : vector<4x4xf32> to vector<4xf32>
    %95 = vector.shape_cast %94 : vector<4xf32> to vector<4x1xf32>
    %96 = vector.broadcast %95 : vector<4x1xf32> to vector<4x4xf32>
    %97 = arith.subf %93, %96 : vector<4x4xf32>
    %98 = math.exp %97 : vector<4x4xf32>
    %cst_37 = arith.constant dense<0.000000e+00> : vector<4xf32>
    %99 = vector.multi_reduction <add>, %98, %cst_37 [1] : vector<4x4xf32> to vector<4xf32>
    %100 = vector.shape_cast %99 : vector<4xf32> to vector<4x1xf32>
    %101 = tpu.reciprocal %100 {approx = true} : vector<4x1xf32> -> vector<4x1xf32>
    %102 = vector.broadcast %101 : vector<4x1xf32> to vector<4x4xf32>
    %103 = arith.mulf %98, %102 : vector<4x4xf32>
    %cst_38 = arith.constant dense<0.000000e+00> : vector<4x8xf32>
    %104 = tpu.matmul %103, %90, %cst_38 {dimension_numbers = #tpu.dot_dimension_numbers<[1], [0], [0], [1], [0, 0, 1, 1], [], []>} : vector<4x4xf32>, vector<4x8xf32>, vector<4x8xf32> -> vector<4x8xf32>
    %105 = tpu.concatenate %53, %70, %87, %104 in 1 : vector<4x8xf32>, vector<4x8xf32>, vector<4x8xf32>, vector<4x8xf32> -> vector<4x32xf32>
    %c0_39 = arith.constant 0 : index
    %c0_40 = arith.constant 0 : index
    %c0_41 = arith.constant 0 : index
    %106 = vector.load %arg7[%c0_39, %c0_40, %c0_41] : memref<1x32x32xf32, #tpu.memory_space<vmem>>, vector<1x32x32xf32>
    %107 = vector.shape_cast %106 : vector<1x32x32xf32> to vector<32x32xf32>
    %cst_42 = arith.constant dense<0.000000e+00> : vector<4x32xf32>
    %108 = tpu.matmul %105, %107, %cst_42 {dimension_numbers = #tpu.dot_dimension_numbers<[1], [0], [0], [1], [0, 0, 1, 1], [], []>} : vector<4x32xf32>, vector<32x32xf32>, vector<4x32xf32> -> vector<4x32xf32>
    %109 = arith.addf %3, %108 : vector<4x32xf32>
    %c0_43 = arith.constant 0 : index
    %c0_44 = arith.constant 0 : index
    %c0_45 = arith.constant 0 : index
    %110 = vector.load %arg8[%c0_43, %c0_44, %c0_45] : memref<1x1x32xf32, #tpu.memory_space<vmem>>, vector<1x1x32xf32>
    %111 = vector.shape_cast %110 : vector<1x1x32xf32> to vector<1x32xf32>
    %112 = vector.broadcast %111 : vector<1x32xf32> to vector<4x32xf32>
    %113 = arith.addf %109, %112 : vector<4x32xf32>
    %c0_46 = arith.constant 0 : index
    %c0_47 = arith.constant 0 : index
    %c0_48 = arith.constant 0 : index
    %114 = vector.load %arg9[%c0_46, %c0_47, %c0_48] : memref<1x1x32xf32, #tpu.memory_space<vmem>>, vector<1x1x32xf32>
    %115 = vector.shape_cast %114 : vector<1x1x32xf32> to vector<1x32xf32>
    %c0_49 = arith.constant 0 : index
    %c0_50 = arith.constant 0 : index
    %c0_51 = arith.constant 0 : index
    %116 = vector.load %arg10[%c0_49, %c0_50, %c0_51] : memref<1x1x32xf32, #tpu.memory_space<vmem>>, vector<1x1x32xf32>
    %117 = vector.shape_cast %116 : vector<1x1x32xf32> to vector<1x32xf32>
    %cst_52 = arith.constant dense<0.000000e+00> : vector<4xf32>
    %118 = vector.multi_reduction <add>, %113, %cst_52 [1] : vector<4x32xf32> to vector<4xf32>
    %119 = vector.shape_cast %118 : vector<4xf32> to vector<4x1xf32>
    %cst_53 = arith.constant 3.200000e+01 : f32
    %120 = vector.broadcast %cst_53 : f32 to vector<4x1xf32>
    %121 = arith.divf %119, %120 : vector<4x1xf32>
    %122 = vector.broadcast %121 : vector<4x1xf32> to vector<4x32xf32>
    %123 = arith.subf %113, %122 : vector<4x32xf32>
    %124 = arith.mulf %123, %123 : vector<4x32xf32>
    %cst_54 = arith.constant dense<0.000000e+00> : vector<4xf32>
    %125 = vector.multi_reduction <add>, %124, %cst_54 [1] : vector<4x32xf32> to vector<4xf32>
    %126 = vector.shape_cast %125 : vector<4xf32> to vector<4x1xf32>
    %cst_55 = arith.constant 3.200000e+01 : f32
    %127 = vector.broadcast %cst_55 : f32 to vector<4x1xf32>
    %128 = arith.divf %126, %127 : vector<4x1xf32>
    %129 = vector.broadcast %121 : vector<4x1xf32> to vector<4x32xf32>
    %130 = arith.subf %113, %129 : vector<4x32xf32>
    %cst_56 = arith.constant 9.99999974E-6 : f32
    %131 = vector.broadcast %cst_56 : f32 to vector<4x1xf32>
    %132 = arith.addf %128, %131 : vector<4x1xf32>
    %133 = math.rsqrt %132 : vector<4x1xf32>
    %134 = vector.broadcast %133 : vector<4x1xf32> to vector<4x32xf32>
    %135 = arith.mulf %130, %134 : vector<4x32xf32>
    %136 = vector.broadcast %115 : vector<1x32xf32> to vector<4x32xf32>
    %137 = arith.mulf %135, %136 : vector<4x32xf32>
    %138 = vector.broadcast %117 : vector<1x32xf32> to vector<4x32xf32>
    %139 = arith.addf %137, %138 : vector<4x32xf32>
    %c0_57 = arith.constant 0 : index
    %c0_58 = arith.constant 0 : index
    %c0_59 = arith.constant 0 : index
    %140 = vector.load %arg11[%c0_57, %c0_58, %c0_59] : memref<1x32x128xf32, #tpu.memory_space<vmem>>, vector<1x32x128xf32>
    %141 = vector.shape_cast %140 : vector<1x32x128xf32> to vector<32x128xf32>
    %cst_60 = arith.constant dense<0.000000e+00> : vector<4x128xf32>
    %142 = tpu.matmul %139, %141, %cst_60 {dimension_numbers = #tpu.dot_dimension_numbers<[1], [0], [0], [1], [0, 0, 1, 1], [], []>} : vector<4x32xf32>, vector<32x128xf32>, vector<4x128xf32> -> vector<4x128xf32>
    %c0_61 = arith.constant 0 : index
    %c0_62 = arith.constant 0 : index
    %c0_63 = arith.constant 0 : index
    %143 = vector.load %arg12[%c0_61, %c0_62, %c0_63] : memref<1x1x128xf32, #tpu.memory_space<vmem>>, vector<1x1x128xf32>
    %144 = vector.shape_cast %143 : vector<1x1x128xf32> to vector<1x128xf32>
    %145 = vector.broadcast %144 : vector<1x128xf32> to vector<4x128xf32>
    %146 = arith.addf %142, %145 : vector<4x128xf32>
    %147 = arith.mulf %146, %146 : vector<4x128xf32>
    %148 = arith.mulf %146, %147 : vector<4x128xf32>
    %cst_64 = arith.constant 4.471500e-02 : f32
    %149 = vector.broadcast %cst_64 : f32 to vector<4x128xf32>
    %150 = arith.mulf %149, %148 : vector<4x128xf32>
    %151 = arith.addf %146, %150 : vector<4x128xf32>
    %cst_65 = arith.constant 0.797884583 : f32
    %152 = vector.broadcast %cst_65 : f32 to vector<4x128xf32>
    %153 = arith.mulf %152, %151 : vector<4x128xf32>
    %154 = math.tanh %153 : vector<4x128xf32>
    %cst_66 = arith.constant 1.000000e+00 : f32
    %155 = vector.broadcast %cst_66 : f32 to vector<4x128xf32>
    %156 = arith.addf %155, %154 : vector<4x128xf32>
    %cst_67 = arith.constant 5.000000e-01 : f32
    %157 = vector.broadcast %cst_67 : f32 to vector<4x128xf32>
    %158 = arith.mulf %157, %156 : vector<4x128xf32>
    %159 = arith.mulf %146, %158 : vector<4x128xf32>
    %c0_68 = arith.constant 0 : index
    %c0_69 = arith.constant 0 : index
    %c0_70 = arith.constant 0 : index
    %160 = vector.load %arg13[%c0_68, %c0_69, %c0_70] : memref<1x128x32xf32, #tpu.memory_space<vmem>>, vector<1x128x32xf32>
    %161 = vector.shape_cast %160 : vector<1x128x32xf32> to vector<128x32xf32>
    %cst_71 = arith.constant dense<0.000000e+00> : vector<4x32xf32>
    %162 = tpu.matmul %159, %161, %cst_71 {dimension_numbers = #tpu.dot_dimension_numbers<[1], [0], [0], [1], [0, 0, 1, 1], [], []>} : vector<4x128xf32>, vector<128x32xf32>, vector<4x32xf32> -> vector<4x32xf32>
    %163 = arith.addf %113, %162 : vector<4x32xf32>
    %c0_72 = arith.constant 0 : index
    %c0_73 = arith.constant 0 : index
    %c0_74 = arith.constant 0 : index
    %164 = vector.load %arg14[%c0_72, %c0_73, %c0_74] : memref<1x1x32xf32, #tpu.memory_space<vmem>>, vector<1x1x32xf32>
    %165 = vector.shape_cast %164 : vector<1x1x32xf32> to vector<1x32xf32>
    %166 = vector.broadcast %165 : vector<1x32xf32> to vector<4x32xf32>
    %167 = arith.addf %163, %166 : vector<4x32xf32>
    %c0_75 = arith.constant 0 : index
    %c0_76 = arith.constant 0 : index
    %168 = vector.load %arg16[%c0_75, %c0_76] : memref<4x32xf32, #tpu.memory_space<vmem>>, vector<4x32xf32>
    tpu.vector_store %arg16[%c0_75, %c0_76], %167 {strides = array<i32>} : memref<4x32xf32, #tpu.memory_space<vmem>>, vector<4x32xf32>,
    %c1_i32 = arith.constant 1 : i32
    %169 = arith.cmpi eq, %arg1, %c1_i32 : i32
    %170 = arith.extui %169 : i1 to i32
    %c0_i32_77 = arith.constant 0 : i32
    %171 = arith.cmpi ne, %170, %c0_i32_77 : i32
    scf.if %171 {
      %c0_78 = arith.constant 0 : index
      %c0_79 = arith.constant 0 : index
      %c0_80 = arith.constant 0 : index
      %172 = vector.load %arg15[%c0_78, %c0_79, %c0_80] : memref<1x4x32xf32, #tpu.memory_space<vmem>>, vector<1x4x32xf32>
      %173 = vector.shape_cast %172 : vector<1x4x32xf32> to vector<4x32xf32>
      %174 = vector.shape_cast %167 : vector<4x32xf32> to vector<1x4x32xf32>
      tpu.vector_store %arg15[%c0_78, %c0_79, %c0_80], %174 {strides = array<i32>} : memref<1x4x32xf32, #tpu.memory_space<vmem>>, vector<1x4x32xf32>,
    } else {
    }
    return
  }
  func.func @transform_0(%arg0: i32, %arg1: i32) -> (i32, i32, i32) {
    %c0_i32 = arith.constant 0 : i32
    %c0_i32_0 = arith.constant 0 : i32
    %c0_i32_1 = arith.constant 0 : i32
    return %arg0, %c0_i32, %c0_i32_0 : i32, i32, i32
  }
  func.func @transform_1(%arg0: i32, %arg1: i32) -> (i32, i32, i32) {
    %c0_i32 = arith.constant 0 : i32
    %c0_i32_0 = arith.constant 0 : i32
    %c0_i32_1 = arith.constant 0 : i32
    return %arg1, %c0_i32, %c0_i32_0 : i32, i32, i32
  }
  func.func @transform_2(%arg0: i32, %arg1: i32) -> (i32, i32, i32) {
    %c0_i32 = arith.constant 0 : i32
    %c0_i32_0 = arith.constant 0 : i32
    %c0_i32_1 = arith.constant 0 : i32
    return %arg1, %c0_i32, %c0_i32_0 : i32, i32, i32
  }
  func.func @transform_3(%arg0: i32, %arg1: i32) -> (i32, i32, i32) {
    %c0_i32 = arith.constant 0 : i32
    %c0_i32_0 = arith.constant 0 : i32
    %c0_i32_1 = arith.constant 0 : i32
    return %arg1, %c0_i32, %c0_i32_0 : i32, i32, i32
  }
  func.func @transform_4(%arg0: i32, %arg1: i32) -> (i32, i32, i32) {
    %c0_i32 = arith.constant 0 : i32
    %c0_i32_0 = arith.constant 0 : i32
    %c0_i32_1 = arith.constant 0 : i32
    return %arg1, %c0_i32, %c0_i32_0 : i32, i32, i32
  }
  func.func @transform_5(%arg0: i32, %arg1: i32) -> (i32, i32, i32) {
    %c0_i32 = arith.constant 0 : i32
    %c0_i32_0 = arith.constant 0 : i32
    %c0_i32_1 = arith.constant 0 : i32
    return %arg1, %c0_i32, %c0_i32_0 : i32, i32, i32
  }
  func.func @transform_6(%arg0: i32, %arg1: i32) -> (i32, i32, i32) {
    %c0_i32 = arith.constant 0 : i32
    %c0_i32_0 = arith.constant 0 : i32
    %c0_i32_1 = arith.constant 0 : i32
    return %arg1, %c0_i32, %c0_i32_0 : i32, i32, i32
  }
  func.func @transform_7(%arg0: i32, %arg1: i32) -> (i32, i32, i32) {
    %c0_i32 = arith.constant 0 : i32
    %c0_i32_0 = arith.constant 0 : i32
    %c0_i32_1 = arith.constant 0 : i32
    return %arg1, %c0_i32, %c0_i32_0 : i32, i32, i32
  }
  func.func @transform_8(%arg0: i32, %arg1: i32) -> (i32, i32, i32) {
    %c0_i32 = arith.constant 0 : i32
    %c0_i32_0 = arith.constant 0 : i32
    %c0_i32_1 = arith.constant 0 : i32
    return %arg1, %c0_i32, %c0_i32_0 : i32, i32, i32
  }
  func.func @transform_9(%arg0: i32, %arg1: i32) -> (i32, i32, i32) {
    %c0_i32 = arith.constant 0 : i32
    %c0_i32_0 = arith.constant 0 : i32
    %c0_i32_1 = arith.constant 0 : i32
    return %arg1, %c0_i32, %c0_i32_0 : i32, i32, i32
  }
  func.func @transform_10(%arg0: i32, %arg1: i32) -> (i32, i32, i32) {
    %c0_i32 = arith.constant 0 : i32
    %c0_i32_0 = arith.constant 0 : i32
    %c0_i32_1 = arith.constant 0 : i32
    return %arg1, %c0_i32, %c0_i32_0 : i32, i32, i32
  }
  func.func @transform_11(%arg0: i32, %arg1: i32) -> (i32, i32, i32) {
    %c0_i32 = arith.constant 0 : i32
    %c0_i32_0 = arith.constant 0 : i32
    %c0_i32_1 = arith.constant 0 : i32
    return %arg1, %c0_i32, %c0_i32_0 : i32, i32, i32
  }
  func.func @transform_12(%arg0: i32, %arg1: i32) -> (i32, i32, i32) {
    %c0_i32 = arith.constant 0 : i32
    %c0_i32_0 = arith.constant 0 : i32
    %c0_i32_1 = arith.constant 0 : i32
    return %arg1, %c0_i32, %c0_i32_0 : i32, i32, i32
  }
  func.func @transform_13(%arg0: i32, %arg1: i32) -> (i32, i32, i32) {
    %c0_i32 = arith.constant 0 : i32
    %c0_i32_0 = arith.constant 0 : i32
    %c0_i32_1 = arith.constant 0 : i32
    return %arg0, %c0_i32, %c0_i32_0 : i32, i32, i32
  }
}

module attributes {stable_mosaic.version = 11 : i64} {
  func.func @_linear_kernel(%arg0: i32, %arg1: memref<1x4x48xf32, #tpu.memory_space<vmem>>, %arg2: memref<48x32xf32, #tpu.memory_space<vmem>>, %arg3: memref<1x32xf32, #tpu.memory_space<vmem>>, %arg4: memref<1x4x32xf32, #tpu.memory_space<vmem>>, %arg5: memref<1x4x32xf32, #tpu.memory_space<vmem>>) attributes {dimension_semantics = [#tpu.dimension_semantics<parallel>], iteration_bounds = array<i64: 2>, scalar_prefetch = 0 : i64, scratch_operands = 0 : i64, tpu.core_type = #tpu.core_type<tc>, window_params = [{transform_indices = @transform_0, window_bounds = array<i64: 1, 4, 48>}, {pipeline_mode = #tpu.pipeline_mode<synchronous>, transform_indices = @transform_1, window_bounds = array<i64: 48, 32>}, {pipeline_mode = #tpu.pipeline_mode<synchronous>, transform_indices = @transform_2, window_bounds = array<i64: 1, 32>}, {transform_indices = @transform_3, window_bounds = array<i64: 1, 4, 32>}, {transform_indices = @transform_4, window_bounds = array<i64: 1, 4, 32>}]} {
    %c0 = arith.constant 0 : index
    %c0_0 = arith.constant 0 : index
    %c0_1 = arith.constant 0 : index
    %0 = vector.load %arg1[%c0, %c0_0, %c0_1] : memref<1x4x48xf32, #tpu.memory_space<vmem>>, vector<1x4x48xf32>
    %1 = vector.shape_cast %0 : vector<1x4x48xf32> to vector<4x48xf32>
    %c0_2 = arith.constant 0 : index
    %c0_3 = arith.constant 0 : index
    %2 = vector.load %arg2[%c0_2, %c0_3] : memref<48x32xf32, #tpu.memory_space<vmem>>, vector<48x32xf32>
    %cst = arith.constant dense<0.000000e+00> : vector<4x32xf32>
    %3 = tpu.matmul %1, %2, %cst {dimension_numbers = #tpu.dot_dimension_numbers<[1], [0], [0], [1], [0, 0, 1, 1], [], []>} : vector<4x48xf32>, vector<48x32xf32>, vector<4x32xf32> -> vector<4x32xf32>
    %c0_4 = arith.constant 0 : index
    %c0_5 = arith.constant 0 : index
    %4 = vector.load %arg3[%c0_4, %c0_5] : memref<1x32xf32, #tpu.memory_space<vmem>>, vector<1x32xf32>
    %5 = vector.broadcast %4 : vector<1x32xf32> to vector<4x32xf32>
    %6 = arith.addf %3, %5 : vector<4x32xf32>
    %c0_6 = arith.constant 0 : index
    %c0_7 = arith.constant 0 : index
    %c0_8 = arith.constant 0 : index
    %7 = vector.load %arg4[%c0_6, %c0_7, %c0_8] : memref<1x4x32xf32, #tpu.memory_space<vmem>>, vector<1x4x32xf32>
    %8 = vector.shape_cast %7 : vector<1x4x32xf32> to vector<4x32xf32>
    %9 = arith.addf %6, %8 : vector<4x32xf32>
    %c0_9 = arith.constant 0 : index
    %c0_10 = arith.constant 0 : index
    %c0_11 = arith.constant 0 : index
    %10 = vector.load %arg5[%c0_9, %c0_10, %c0_11] : memref<1x4x32xf32, #tpu.memory_space<vmem>>, vector<1x4x32xf32>
    %11 = vector.shape_cast %10 : vector<1x4x32xf32> to vector<4x32xf32>
    %12 = vector.shape_cast %9 : vector<4x32xf32> to vector<1x4x32xf32>
    tpu.vector_store %arg5[%c0_9, %c0_10, %c0_11], %12 {strides = array<i32>} : memref<1x4x32xf32, #tpu.memory_space<vmem>>, vector<1x4x32xf32>,
    return
  }
  func.func @transform_0(%arg0: i32) -> (i32, i32, i32) {
    %c0_i32 = arith.constant 0 : i32
    %c0_i32_0 = arith.constant 0 : i32
    %c0_i32_1 = arith.constant 0 : i32
    return %arg0, %c0_i32, %c0_i32_0 : i32, i32, i32
  }
  func.func @transform_1(%arg0: i32) -> (i32, i32) {
    %c0_i32 = arith.constant 0 : i32
    %c0_i32_0 = arith.constant 0 : i32
    %c0_i32_1 = arith.constant 0 : i32
    return %c0_i32, %c0_i32_0 : i32, i32
  }
  func.func @transform_2(%arg0: i32) -> (i32, i32) {
    %c0_i32 = arith.constant 0 : i32
    %c0_i32_0 = arith.constant 0 : i32
    %c0_i32_1 = arith.constant 0 : i32
    return %c0_i32, %c0_i32_0 : i32, i32
  }
  func.func @transform_3(%arg0: i32) -> (i32, i32, i32) {
    %c0_i32 = arith.constant 0 : i32
    %c0_i32_0 = arith.constant 0 : i32
    %c0_i32_1 = arith.constant 0 : i32
    return %arg0, %c0_i32, %c0_i32_0 : i32, i32, i32
  }
  func.func @transform_4(%arg0: i32) -> (i32, i32, i32) {
    %c0_i32 = arith.constant 0 : i32
    %c0_i32_0 = arith.constant 0 : i32
    %c0_i32_1 = arith.constant 0 : i32
    return %arg0, %c0_i32, %c0_i32_0 : i32, i32, i32
  }
}

module attributes {stable_mosaic.version = 11 : i64} {
  func.func @_linear_kernel(%arg0: i32, %arg1: memref<1x4x32xf32, #tpu.memory_space<vmem>>, %arg2: memref<32x64xf32, #tpu.memory_space<vmem>>, %arg3: memref<1x64xf32, #tpu.memory_space<vmem>>, %arg4: memref<1x4x64xf32, #tpu.memory_space<vmem>>) attributes {dimension_semantics = [#tpu.dimension_semantics<parallel>], iteration_bounds = array<i64: 2>, scalar_prefetch = 0 : i64, scratch_operands = 0 : i64, tpu.core_type = #tpu.core_type<tc>, window_params = [{transform_indices = @transform_0, window_bounds = array<i64: 1, 4, 32>}, {pipeline_mode = #tpu.pipeline_mode<synchronous>, transform_indices = @transform_1, window_bounds = array<i64: 32, 64>}, {pipeline_mode = #tpu.pipeline_mode<synchronous>, transform_indices = @transform_2, window_bounds = array<i64: 1, 64>}, {transform_indices = @transform_3, window_bounds = array<i64: 1, 4, 64>}]} {
    %c0 = arith.constant 0 : index
    %c0_0 = arith.constant 0 : index
    %c0_1 = arith.constant 0 : index
    %0 = vector.load %arg1[%c0, %c0_0, %c0_1] : memref<1x4x32xf32, #tpu.memory_space<vmem>>, vector<1x4x32xf32>
    %1 = vector.shape_cast %0 : vector<1x4x32xf32> to vector<4x32xf32>
    %c0_2 = arith.constant 0 : index
    %c0_3 = arith.constant 0 : index
    %2 = vector.load %arg2[%c0_2, %c0_3] : memref<32x64xf32, #tpu.memory_space<vmem>>, vector<32x64xf32>
    %cst = arith.constant dense<0.000000e+00> : vector<4x64xf32>
    %3 = tpu.matmul %1, %2, %cst {dimension_numbers = #tpu.dot_dimension_numbers<[1], [0], [0], [1], [0, 0, 1, 1], [], []>} : vector<4x32xf32>, vector<32x64xf32>, vector<4x64xf32> -> vector<4x64xf32>
    %c0_4 = arith.constant 0 : index
    %c0_5 = arith.constant 0 : index
    %4 = vector.load %arg3[%c0_4, %c0_5] : memref<1x64xf32, #tpu.memory_space<vmem>>, vector<1x64xf32>
    %5 = vector.broadcast %4 : vector<1x64xf32> to vector<4x64xf32>
    %6 = arith.addf %3, %5 : vector<4x64xf32>
    %c0_6 = arith.constant 0 : index
    %c0_7 = arith.constant 0 : index
    %c0_8 = arith.constant 0 : index
    %7 = vector.load %arg4[%c0_6, %c0_7, %c0_8] : memref<1x4x64xf32, #tpu.memory_space<vmem>>, vector<1x4x64xf32>
    %8 = vector.shape_cast %7 : vector<1x4x64xf32> to vector<4x64xf32>
    %9 = vector.shape_cast %6 : vector<4x64xf32> to vector<1x4x64xf32>
    tpu.vector_store %arg4[%c0_6, %c0_7, %c0_8], %9 {strides = array<i32>} : memref<1x4x64xf32, #tpu.memory_space<vmem>>, vector<1x4x64xf32>,
    return
  }
  func.func @transform_0(%arg0: i32) -> (i32, i32, i32) {
    %c0_i32 = arith.constant 0 : i32
    %c0_i32_0 = arith.constant 0 : i32
    %c0_i32_1 = arith.constant 0 : i32
    return %arg0, %c0_i32, %c0_i32_0 : i32, i32, i32
  }
  func.func @transform_1(%arg0: i32) -> (i32, i32) {
    %c0_i32 = arith.constant 0 : i32
    %c0_i32_0 = arith.constant 0 : i32
    %c0_i32_1 = arith.constant 0 : i32
    return %c0_i32, %c0_i32_0 : i32, i32
  }
  func.func @transform_2(%arg0: i32) -> (i32, i32) {
    %c0_i32 = arith.constant 0 : i32
    %c0_i32_0 = arith.constant 0 : i32
    %c0_i32_1 = arith.constant 0 : i32
    return %c0_i32, %c0_i32_0 : i32, i32
  }
  func.func @transform_3(%arg0: i32) -> (i32, i32, i32) {
    %c0_i32 = arith.constant 0 : i32
    %c0_i32_0 = arith.constant 0 : i32
    %c0_i32_1 = arith.constant 0 : i32
    return %arg0, %c0_i32, %c0_i32_0 : i32, i32, i32
  }
}

module attributes {stable_mosaic.version = 11 : i64} {
  func.func @_linear_kernel(%arg0: i32, %arg1: memref<1x12x64xf32, #tpu.memory_space<vmem>>, %arg2: memref<64x32xf32, #tpu.memory_space<vmem>>, %arg3: memref<1x32xf32, #tpu.memory_space<vmem>>, %arg4: memref<1x12x32xf32, #tpu.memory_space<vmem>>) attributes {dimension_semantics = [#tpu.dimension_semantics<parallel>], iteration_bounds = array<i64: 2>, scalar_prefetch = 0 : i64, scratch_operands = 0 : i64, tpu.core_type = #tpu.core_type<tc>, window_params = [{transform_indices = @transform_0, window_bounds = array<i64: 1, 12, 64>}, {pipeline_mode = #tpu.pipeline_mode<synchronous>, transform_indices = @transform_1, window_bounds = array<i64: 64, 32>}, {pipeline_mode = #tpu.pipeline_mode<synchronous>, transform_indices = @transform_2, window_bounds = array<i64: 1, 32>}, {transform_indices = @transform_3, window_bounds = array<i64: 1, 12, 32>}]} {
    %c0 = arith.constant 0 : index
    %c0_0 = arith.constant 0 : index
    %c0_1 = arith.constant 0 : index
    %0 = vector.load %arg1[%c0, %c0_0, %c0_1] : memref<1x12x64xf32, #tpu.memory_space<vmem>>, vector<1x12x64xf32>
    %1 = vector.shape_cast %0 : vector<1x12x64xf32> to vector<12x64xf32>
    %c0_2 = arith.constant 0 : index
    %c0_3 = arith.constant 0 : index
    %2 = vector.load %arg2[%c0_2, %c0_3] : memref<64x32xf32, #tpu.memory_space<vmem>>, vector<64x32xf32>
    %cst = arith.constant dense<0.000000e+00> : vector<12x32xf32>
    %3 = tpu.matmul %1, %2, %cst {dimension_numbers = #tpu.dot_dimension_numbers<[1], [0], [0], [1], [0, 0, 1, 1], [], []>} : vector<12x64xf32>, vector<64x32xf32>, vector<12x32xf32> -> vector<12x32xf32>
    %c0_4 = arith.constant 0 : index
    %c0_5 = arith.constant 0 : index
    %4 = vector.load %arg3[%c0_4, %c0_5] : memref<1x32xf32, #tpu.memory_space<vmem>>, vector<1x32xf32>
    %5 = vector.broadcast %4 : vector<1x32xf32> to vector<12x32xf32>
    %6 = arith.addf %3, %5 : vector<12x32xf32>
    %c0_6 = arith.constant 0 : index
    %c0_7 = arith.constant 0 : index
    %c0_8 = arith.constant 0 : index
    %7 = vector.load %arg4[%c0_6, %c0_7, %c0_8] : memref<1x12x32xf32, #tpu.memory_space<vmem>>, vector<1x12x32xf32>
    %8 = vector.shape_cast %7 : vector<1x12x32xf32> to vector<12x32xf32>
    %9 = vector.shape_cast %6 : vector<12x32xf32> to vector<1x12x32xf32>
    tpu.vector_store %arg4[%c0_6, %c0_7, %c0_8], %9 {strides = array<i32>} : memref<1x12x32xf32, #tpu.memory_space<vmem>>, vector<1x12x32xf32>,
    return
  }
  func.func @transform_0(%arg0: i32) -> (i32, i32, i32) {
    %c0_i32 = arith.constant 0 : i32
    %c0_i32_0 = arith.constant 0 : i32
    %c0_i32_1 = arith.constant 0 : i32
    return %arg0, %c0_i32, %c0_i32_0 : i32, i32, i32
  }
  func.func @transform_1(%arg0: i32) -> (i32, i32) {
    %c0_i32 = arith.constant 0 : i32
    %c0_i32_0 = arith.constant 0 : i32
    %c0_i32_1 = arith.constant 0 : i32
    return %c0_i32, %c0_i32_0 : i32, i32
  }
  func.func @transform_2(%arg0: i32) -> (i32, i32) {
    %c0_i32 = arith.constant 0 : i32
    %c0_i32_0 = arith.constant 0 : i32
    %c0_i32_1 = arith.constant 0 : i32
    return %c0_i32, %c0_i32_0 : i32, i32
  }
  func.func @transform_3(%arg0: i32) -> (i32, i32, i32) {
    %c0_i32 = arith.constant 0 : i32
    %c0_i32_0 = arith.constant 0 : i32
    %c0_i32_1 = arith.constant 0 : i32
    return %arg0, %c0_i32, %c0_i32_0 : i32, i32, i32
  }
}

module attributes {stable_mosaic.version = 11 : i64} {
  func.func @_transformer_stack_kernel(%arg0: i32, %arg1: i32, %arg2: memref<1x16x64xf32, #tpu.memory_space<vmem>>, %arg3: memref<1x1x64xf32, #tpu.memory_space<vmem>>, %arg4: memref<1x1x64xf32, #tpu.memory_space<vmem>>, %arg5: memref<1x64x96xf32, #tpu.memory_space<vmem>>, %arg6: memref<1x1x96xf32, #tpu.memory_space<vmem>>, %arg7: memref<1x32x64xf32, #tpu.memory_space<vmem>>, %arg8: memref<1x1x64xf32, #tpu.memory_space<vmem>>, %arg9: memref<1x1x64xf32, #tpu.memory_space<vmem>>, %arg10: memref<1x1x64xf32, #tpu.memory_space<vmem>>, %arg11: memref<1x64x256xf32, #tpu.memory_space<vmem>>, %arg12: memref<1x1x256xf32, #tpu.memory_space<vmem>>, %arg13: memref<1x256x64xf32, #tpu.memory_space<vmem>>, %arg14: memref<1x1x64xf32, #tpu.memory_space<vmem>>, %arg15: memref<1x16x64xf32, #tpu.memory_space<vmem>>, %arg16: memref<16x64xf32, #tpu.memory_space<vmem>>) attributes {dimension_semantics = [#tpu.dimension_semantics<parallel>, #tpu.dimension_semantics<arbitrary>], iteration_bounds = array<i64: 2, 1>, scalar_prefetch = 0 : i64, scratch_operands = 1 : i64, tpu.core_type = #tpu.core_type<tc>, window_params = [{transform_indices = @transform_0, window_bounds = array<i64: 1, 16, 64>}, {transform_indices = @transform_1, window_bounds = array<i64: 1, 1, 64>}, {transform_indices = @transform_2, window_bounds = array<i64: 1, 1, 64>}, {transform_indices = @transform_3, window_bounds = array<i64: 1, 64, 96>}, {transform_indices = @transform_4, window_bounds = array<i64: 1, 1, 96>}, {transform_indices = @transform_5, window_bounds = array<i64: 1, 32, 64>}, {transform_indices = @transform_6, window_bounds = array<i64: 1, 1, 64>}, {transform_indices = @transform_7, window_bounds = array<i64: 1, 1, 64>}, {transform_indices = @transform_8, window_bounds = array<i64: 1, 1, 64>}, {transform_indices = @transform_9, window_bounds = array<i64: 1, 64, 256>}, {transform_indices = @transform_10, window_bounds = array<i64: 1, 1, 256>}, {transform_indices = @transform_11, window_bounds = array<i64: 1, 256, 64>}, {transform_indices = @transform_12, window_bounds = array<i64: 1, 1, 64>}, {transform_indices = @transform_13, window_bounds = array<i64: 1, 16, 64>}]} {
    %c0_i32 = arith.constant 0 : i32
    %0 = arith.cmpi eq, %arg1, %c0_i32 : i32
    %1 = arith.extui %0 : i1 to i32
    %c0_i32_0 = arith.constant 0 : i32
    %2 = arith.cmpi ne, %1, %c0_i32_0 : i32
    scf.if %2 {
      %c0_69 = arith.constant 0 : index
      %c0_70 = arith.constant 0 : index
      %c0_71 = arith.constant 0 : index
      %138 = vector.load %arg2[%c0_69, %c0_70, %c0_71] : memref<1x16x64xf32, #tpu.memory_space<vmem>>, vector<1x16x64xf32>
      %139 = vector.shape_cast %138 : vector<1x16x64xf32> to vector<16x64xf32>
      %c0_72 = arith.constant 0 : index
      %c0_73 = arith.constant 0 : index
      %140 = vector.load %arg16[%c0_72, %c0_73] : memref<16x64xf32, #tpu.memory_space<vmem>>, vector<16x64xf32>
      tpu.vector_store %arg16[%c0_72, %c0_73], %139 {strides = array<i32>} : memref<16x64xf32, #tpu.memory_space<vmem>>, vector<16x64xf32>,
    } else {
    }
    %c0 = arith.constant 0 : index
    %c0_1 = arith.constant 0 : index
    %3 = vector.load %arg16[%c0, %c0_1] : memref<16x64xf32, #tpu.memory_space<vmem>>, vector<16x64xf32>
    %c0_2 = arith.constant 0 : index
    %c0_3 = arith.constant 0 : index
    %c0_4 = arith.constant 0 : index
    %4 = vector.load %arg3[%c0_2, %c0_3, %c0_4] : memref<1x1x64xf32, #tpu.memory_space<vmem>>, vector<1x1x64xf32>
    %5 = vector.shape_cast %4 : vector<1x1x64xf32> to vector<1x64xf32>
    %c0_5 = arith.constant 0 : index
    %c0_6 = arith.constant 0 : index
    %c0_7 = arith.constant 0 : index
    %6 = vector.load %arg4[%c0_5, %c0_6, %c0_7] : memref<1x1x64xf32, #tpu.memory_space<vmem>>, vector<1x1x64xf32>
    %7 = vector.shape_cast %6 : vector<1x1x64xf32> to vector<1x64xf32>
    %cst = arith.constant dense<0.000000e+00> : vector<16xf32>
    %8 = vector.multi_reduction <add>, %3, %cst [1] : vector<16x64xf32> to vector<16xf32>
    %9 = vector.shape_cast %8 : vector<16xf32> to vector<16x1xf32>
    %cst_8 = arith.constant 6.400000e+01 : f32
    %10 = vector.broadcast %cst_8 : f32 to vector<16x1xf32>
    %11 = arith.divf %9, %10 : vector<16x1xf32>
    %12 = vector.broadcast %11 : vector<16x1xf32> to vector<16x64xf32>
    %13 = arith.subf %3, %12 : vector<16x64xf32>
    %14 = arith.mulf %13, %13 : vector<16x64xf32>
    %cst_9 = arith.constant dense<0.000000e+00> : vector<16xf32>
    %15 = vector.multi_reduction <add>, %14, %cst_9 [1] : vector<16x64xf32> to vector<16xf32>
    %16 = vector.shape_cast %15 : vector<16xf32> to vector<16x1xf32>
    %cst_10 = arith.constant 6.400000e+01 : f32
    %17 = vector.broadcast %cst_10 : f32 to vector<16x1xf32>
    %18 = arith.divf %16, %17 : vector<16x1xf32>
    %19 = vector.broadcast %11 : vector<16x1xf32> to vector<16x64xf32>
    %20 = arith.subf %3, %19 : vector<16x64xf32>
    %cst_11 = arith.constant 9.99999974E-6 : f32
    %21 = vector.broadcast %cst_11 : f32 to vector<16x1xf32>
    %22 = arith.addf %18, %21 : vector<16x1xf32>
    %23 = math.rsqrt %22 : vector<16x1xf32>
    %24 = vector.broadcast %23 : vector<16x1xf32> to vector<16x64xf32>
    %25 = arith.mulf %20, %24 : vector<16x64xf32>
    %26 = vector.broadcast %5 : vector<1x64xf32> to vector<16x64xf32>
    %27 = arith.mulf %25, %26 : vector<16x64xf32>
    %28 = vector.broadcast %7 : vector<1x64xf32> to vector<16x64xf32>
    %29 = arith.addf %27, %28 : vector<16x64xf32>
    %c0_12 = arith.constant 0 : index
    %c0_13 = arith.constant 0 : index
    %c0_14 = arith.constant 0 : index
    %30 = vector.load %arg5[%c0_12, %c0_13, %c0_14] : memref<1x64x96xf32, #tpu.memory_space<vmem>>, vector<1x64x96xf32>
    %31 = vector.shape_cast %30 : vector<1x64x96xf32> to vector<64x96xf32>
    %cst_15 = arith.constant dense<0.000000e+00> : vector<16x96xf32>
    %32 = tpu.matmul %29, %31, %cst_15 {dimension_numbers = #tpu.dot_dimension_numbers<[1], [0], [0], [1], [0, 0, 1, 1], [], []>} : vector<16x64xf32>, vector<64x96xf32>, vector<16x96xf32> -> vector<16x96xf32>
    %c0_16 = arith.constant 0 : index
    %c0_17 = arith.constant 0 : index
    %c0_18 = arith.constant 0 : index
    %33 = vector.load %arg6[%c0_16, %c0_17, %c0_18] : memref<1x1x96xf32, #tpu.memory_space<vmem>>, vector<1x1x96xf32>
    %34 = vector.shape_cast %33 : vector<1x1x96xf32> to vector<1x96xf32>
    %35 = vector.broadcast %34 : vector<1x96xf32> to vector<16x96xf32>
    %36 = arith.addf %32, %35 : vector<16x96xf32>
    %37 = vector.extract_strided_slice %36 {offsets = [0, 0], sizes = [16, 16], strides = [1, 1]} : vector<16x96xf32> to vector<16x16xf32>
    %38 = vector.extract_strided_slice %36 {offsets = [0, 32], sizes = [16, 16], strides = [1, 1]} : vector<16x96xf32> to vector<16x16xf32>
    %39 = vector.extract_strided_slice %36 {offsets = [0, 64], sizes = [16, 16], strides = [1, 1]} : vector<16x96xf32> to vector<16x16xf32>
    %cst_19 = arith.constant dense<0.000000e+00> : vector<16x16xf32>
    %40 = tpu.matmul %37, %38, %cst_19 {dimension_numbers = #tpu.dot_dimension_numbers<[1], [1], [0], [0], [0, 0, 1, 0], [], []>} : vector<16x16xf32>, vector<16x16xf32>, vector<16x16xf32> -> vector<16x16xf32>
    %cst_20 = arith.constant 2.500000e-01 : f32
    %41 = vector.broadcast %cst_20 : f32 to vector<16x16xf32>
    %42 = arith.mulf %40, %41 : vector<16x16xf32>
    %cst_21 = arith.constant dense<0xFF800000> : vector<16xf32>
    %43 = vector.multi_reduction <maximumf>, %42, %cst_21 [1] : vector<16x16xf32> to vector<16xf32>
    %44 = vector.shape_cast %43 : vector<16xf32> to vector<16x1xf32>
    %45 = vector.broadcast %44 : vector<16x1xf32> to vector<16x16xf32>
    %46 = arith.subf %42, %45 : vector<16x16xf32>
    %47 = math.exp %46 : vector<16x16xf32>
    %cst_22 = arith.constant dense<0.000000e+00> : vector<16xf32>
    %48 = vector.multi_reduction <add>, %47, %cst_22 [1] : vector<16x16xf32> to vector<16xf32>
    %49 = vector.shape_cast %48 : vector<16xf32> to vector<16x1xf32>
    %50 = tpu.reciprocal %49 {approx = true} : vector<16x1xf32> -> vector<16x1xf32>
    %51 = vector.broadcast %50 : vector<16x1xf32> to vector<16x16xf32>
    %52 = arith.mulf %47, %51 : vector<16x16xf32>
    %cst_23 = arith.constant dense<0.000000e+00> : vector<16x16xf32>
    %53 = tpu.matmul %52, %39, %cst_23 {dimension_numbers = #tpu.dot_dimension_numbers<[1], [0], [0], [1], [0, 0, 1, 1], [], []>} : vector<16x16xf32>, vector<16x16xf32>, vector<16x16xf32> -> vector<16x16xf32>
    %54 = vector.extract_strided_slice %36 {offsets = [0, 16], sizes = [16, 16], strides = [1, 1]} : vector<16x96xf32> to vector<16x16xf32>
    %55 = vector.extract_strided_slice %36 {offsets = [0, 48], sizes = [16, 16], strides = [1, 1]} : vector<16x96xf32> to vector<16x16xf32>
    %56 = vector.extract_strided_slice %36 {offsets = [0, 80], sizes = [16, 16], strides = [1, 1]} : vector<16x96xf32> to vector<16x16xf32>
    %cst_24 = arith.constant dense<0.000000e+00> : vector<16x16xf32>
    %57 = tpu.matmul %54, %55, %cst_24 {dimension_numbers = #tpu.dot_dimension_numbers<[1], [1], [0], [0], [0, 0, 1, 0], [], []>} : vector<16x16xf32>, vector<16x16xf32>, vector<16x16xf32> -> vector<16x16xf32>
    %cst_25 = arith.constant 2.500000e-01 : f32
    %58 = vector.broadcast %cst_25 : f32 to vector<16x16xf32>
    %59 = arith.mulf %57, %58 : vector<16x16xf32>
    %cst_26 = arith.constant dense<0xFF800000> : vector<16xf32>
    %60 = vector.multi_reduction <maximumf>, %59, %cst_26 [1] : vector<16x16xf32> to vector<16xf32>
    %61 = vector.shape_cast %60 : vector<16xf32> to vector<16x1xf32>
    %62 = vector.broadcast %61 : vector<16x1xf32> to vector<16x16xf32>
    %63 = arith.subf %59, %62 : vector<16x16xf32>
    %64 = math.exp %63 : vector<16x16xf32>
    %cst_27 = arith.constant dense<0.000000e+00> : vector<16xf32>
    %65 = vector.multi_reduction <add>, %64, %cst_27 [1] : vector<16x16xf32> to vector<16xf32>
    %66 = vector.shape_cast %65 : vector<16xf32> to vector<16x1xf32>
    %67 = tpu.reciprocal %66 {approx = true} : vector<16x1xf32> -> vector<16x1xf32>
    %68 = vector.broadcast %67 : vector<16x1xf32> to vector<16x16xf32>
    %69 = arith.mulf %64, %68 : vector<16x16xf32>
    %cst_28 = arith.constant dense<0.000000e+00> : vector<16x16xf32>
    %70 = tpu.matmul %69, %56, %cst_28 {dimension_numbers = #tpu.dot_dimension_numbers<[1], [0], [0], [1], [0, 0, 1, 1], [], []>} : vector<16x16xf32>, vector<16x16xf32>, vector<16x16xf32> -> vector<16x16xf32>
    %71 = tpu.concatenate %53, %70 in 1 : vector<16x16xf32>, vector<16x16xf32> -> vector<16x32xf32>
    %c0_29 = arith.constant 0 : index
    %c0_30 = arith.constant 0 : index
    %c0_31 = arith.constant 0 : index
    %72 = vector.load %arg7[%c0_29, %c0_30, %c0_31] : memref<1x32x64xf32, #tpu.memory_space<vmem>>, vector<1x32x64xf32>
    %73 = vector.shape_cast %72 : vector<1x32x64xf32> to vector<32x64xf32>
    %cst_32 = arith.constant dense<0.000000e+00> : vector<16x64xf32>
    %74 = tpu.matmul %71, %73, %cst_32 {dimension_numbers = #tpu.dot_dimension_numbers<[1], [0], [0], [1], [0, 0, 1, 1], [], []>} : vector<16x32xf32>, vector<32x64xf32>, vector<16x64xf32> -> vector<16x64xf32>
    %75 = arith.addf %3, %74 : vector<16x64xf32>
    %c0_33 = arith.constant 0 : index
    %c0_34 = arith.constant 0 : index
    %c0_35 = arith.constant 0 : index
    %76 = vector.load %arg8[%c0_33, %c0_34, %c0_35] : memref<1x1x64xf32, #tpu.memory_space<vmem>>, vector<1x1x64xf32>
    %77 = vector.shape_cast %76 : vector<1x1x64xf32> to vector<1x64xf32>
    %78 = vector.broadcast %77 : vector<1x64xf32> to vector<16x64xf32>
    %79 = arith.addf %75, %78 : vector<16x64xf32>
    %c0_36 = arith.constant 0 : index
    %c0_37 = arith.constant 0 : index
    %c0_38 = arith.constant 0 : index
    %80 = vector.load %arg9[%c0_36, %c0_37, %c0_38] : memref<1x1x64xf32, #tpu.memory_space<vmem>>, vector<1x1x64xf32>
    %81 = vector.shape_cast %80 : vector<1x1x64xf32> to vector<1x64xf32>
    %c0_39 = arith.constant 0 : index
    %c0_40 = arith.constant 0 : index
    %c0_41 = arith.constant 0 : index
    %82 = vector.load %arg10[%c0_39, %c0_40, %c0_41] : memref<1x1x64xf32, #tpu.memory_space<vmem>>, vector<1x1x64xf32>
    %83 = vector.shape_cast %82 : vector<1x1x64xf32> to vector<1x64xf32>
    %cst_42 = arith.constant dense<0.000000e+00> : vector<16xf32>
    %84 = vector.multi_reduction <add>, %79, %cst_42 [1] : vector<16x64xf32> to vector<16xf32>
    %85 = vector.shape_cast %84 : vector<16xf32> to vector<16x1xf32>
    %cst_43 = arith.constant 6.400000e+01 : f32
    %86 = vector.broadcast %cst_43 : f32 to vector<16x1xf32>
    %87 = arith.divf %85, %86 : vector<16x1xf32>
    %88 = vector.broadcast %87 : vector<16x1xf32> to vector<16x64xf32>
    %89 = arith.subf %79, %88 : vector<16x64xf32>
    %90 = arith.mulf %89, %89 : vector<16x64xf32>
    %cst_44 = arith.constant dense<0.000000e+00> : vector<16xf32>
    %91 = vector.multi_reduction <add>, %90, %cst_44 [1] : vector<16x64xf32> to vector<16xf32>
    %92 = vector.shape_cast %91 : vector<16xf32> to vector<16x1xf32>
    %cst_45 = arith.constant 6.400000e+01 : f32
    %93 = vector.broadcast %cst_45 : f32 to vector<16x1xf32>
    %94 = arith.divf %92, %93 : vector<16x1xf32>
    %95 = vector.broadcast %87 : vector<16x1xf32> to vector<16x64xf32>
    %96 = arith.subf %79, %95 : vector<16x64xf32>
    %cst_46 = arith.constant 9.99999974E-6 : f32
    %97 = vector.broadcast %cst_46 : f32 to vector<16x1xf32>
    %98 = arith.addf %94, %97 : vector<16x1xf32>
    %99 = math.rsqrt %98 : vector<16x1xf32>
    %100 = vector.broadcast %99 : vector<16x1xf32> to vector<16x64xf32>
    %101 = arith.mulf %96, %100 : vector<16x64xf32>
    %102 = vector.broadcast %81 : vector<1x64xf32> to vector<16x64xf32>
    %103 = arith.mulf %101, %102 : vector<16x64xf32>
    %104 = vector.broadcast %83 : vector<1x64xf32> to vector<16x64xf32>
    %105 = arith.addf %103, %104 : vector<16x64xf32>
    %c0_47 = arith.constant 0 : index
    %c0_48 = arith.constant 0 : index
    %c0_49 = arith.constant 0 : index
    %106 = vector.load %arg11[%c0_47, %c0_48, %c0_49] : memref<1x64x256xf32, #tpu.memory_space<vmem>>, vector<1x64x256xf32>
    %107 = vector.shape_cast %106 : vector<1x64x256xf32> to vector<64x256xf32>
    %cst_50 = arith.constant dense<0.000000e+00> : vector<16x256xf32>
    %108 = tpu.matmul %105, %107, %cst_50 {dimension_numbers = #tpu.dot_dimension_numbers<[1], [0], [0], [1], [0, 0, 1, 1], [], []>} : vector<16x64xf32>, vector<64x256xf32>, vector<16x256xf32> -> vector<16x256xf32>
    %c0_51 = arith.constant 0 : index
    %c0_52 = arith.constant 0 : index
    %c0_53 = arith.constant 0 : index
    %109 = vector.load %arg12[%c0_51, %c0_52, %c0_53] : memref<1x1x256xf32, #tpu.memory_space<vmem>>, vector<1x1x256xf32>
    %110 = vector.shape_cast %109 : vector<1x1x256xf32> to vector<1x256xf32>
    %111 = vector.broadcast %110 : vector<1x256xf32> to vector<16x256xf32>
    %112 = arith.addf %108, %111 : vector<16x256xf32>
    %113 = arith.mulf %112, %112 : vector<16x256xf32>
    %114 = arith.mulf %112, %113 : vector<16x256xf32>
    %cst_54 = arith.constant 4.471500e-02 : f32
    %115 = vector.broadcast %cst_54 : f32 to vector<16x256xf32>
    %116 = arith.mulf %115, %114 : vector<16x256xf32>
    %117 = arith.addf %112, %116 : vector<16x256xf32>
    %cst_55 = arith.constant 0.797884583 : f32
    %118 = vector.broadcast %cst_55 : f32 to vector<16x256xf32>
    %119 = arith.mulf %118, %117 : vector<16x256xf32>
    %120 = math.tanh %119 : vector<16x256xf32>
    %cst_56 = arith.constant 1.000000e+00 : f32
    %121 = vector.broadcast %cst_56 : f32 to vector<16x256xf32>
    %122 = arith.addf %121, %120 : vector<16x256xf32>
    %cst_57 = arith.constant 5.000000e-01 : f32
    %123 = vector.broadcast %cst_57 : f32 to vector<16x256xf32>
    %124 = arith.mulf %123, %122 : vector<16x256xf32>
    %125 = arith.mulf %112, %124 : vector<16x256xf32>
    %c0_58 = arith.constant 0 : index
    %c0_59 = arith.constant 0 : index
    %c0_60 = arith.constant 0 : index
    %126 = vector.load %arg13[%c0_58, %c0_59, %c0_60] : memref<1x256x64xf32, #tpu.memory_space<vmem>>, vector<1x256x64xf32>
    %127 = vector.shape_cast %126 : vector<1x256x64xf32> to vector<256x64xf32>
    %cst_61 = arith.constant dense<0.000000e+00> : vector<16x64xf32>
    %128 = tpu.matmul %125, %127, %cst_61 {dimension_numbers = #tpu.dot_dimension_numbers<[1], [0], [0], [1], [0, 0, 1, 1], [], []>} : vector<16x256xf32>, vector<256x64xf32>, vector<16x64xf32> -> vector<16x64xf32>
    %129 = arith.addf %79, %128 : vector<16x64xf32>
    %c0_62 = arith.constant 0 : index
    %c0_63 = arith.constant 0 : index
    %c0_64 = arith.constant 0 : index
    %130 = vector.load %arg14[%c0_62, %c0_63, %c0_64] : memref<1x1x64xf32, #tpu.memory_space<vmem>>, vector<1x1x64xf32>
    %131 = vector.shape_cast %130 : vector<1x1x64xf32> to vector<1x64xf32>
    %132 = vector.broadcast %131 : vector<1x64xf32> to vector<16x64xf32>
    %133 = arith.addf %129, %132 : vector<16x64xf32>
    %c0_65 = arith.constant 0 : index
    %c0_66 = arith.constant 0 : index
    %134 = vector.load %arg16[%c0_65, %c0_66] : memref<16x64xf32, #tpu.memory_space<vmem>>, vector<16x64xf32>
    tpu.vector_store %arg16[%c0_65, %c0_66], %133 {strides = array<i32>} : memref<16x64xf32, #tpu.memory_space<vmem>>, vector<16x64xf32>,
    %c0_i32_67 = arith.constant 0 : i32
    %135 = arith.cmpi eq, %arg1, %c0_i32_67 : i32
    %136 = arith.extui %135 : i1 to i32
    %c0_i32_68 = arith.constant 0 : i32
    %137 = arith.cmpi ne, %136, %c0_i32_68 : i32
    scf.if %137 {
      %c0_69 = arith.constant 0 : index
      %c0_70 = arith.constant 0 : index
      %c0_71 = arith.constant 0 : index
      %138 = vector.load %arg15[%c0_69, %c0_70, %c0_71] : memref<1x16x64xf32, #tpu.memory_space<vmem>>, vector<1x16x64xf32>
      %139 = vector.shape_cast %138 : vector<1x16x64xf32> to vector<16x64xf32>
      %140 = vector.shape_cast %133 : vector<16x64xf32> to vector<1x16x64xf32>
      tpu.vector_store %arg15[%c0_69, %c0_70, %c0_71], %140 {strides = array<i32>} : memref<1x16x64xf32, #tpu.memory_space<vmem>>, vector<1x16x64xf32>,
    } else {
    }
    return
  }
  func.func @transform_0(%arg0: i32, %arg1: i32) -> (i32, i32, i32) {
    %c0_i32 = arith.constant 0 : i32
    %c0_i32_0 = arith.constant 0 : i32
    %c0_i32_1 = arith.constant 0 : i32
    return %arg0, %c0_i32, %c0_i32_0 : i32, i32, i32
  }
  func.func @transform_1(%arg0: i32, %arg1: i32) -> (i32, i32, i32) {
    %c0_i32 = arith.constant 0 : i32
    %c0_i32_0 = arith.constant 0 : i32
    %c0_i32_1 = arith.constant 0 : i32
    return %arg1, %c0_i32, %c0_i32_0 : i32, i32, i32
  }
  func.func @transform_2(%arg0: i32, %arg1: i32) -> (i32, i32, i32) {
    %c0_i32 = arith.constant 0 : i32
    %c0_i32_0 = arith.constant 0 : i32
    %c0_i32_1 = arith.constant 0 : i32
    return %arg1, %c0_i32, %c0_i32_0 : i32, i32, i32
  }
  func.func @transform_3(%arg0: i32, %arg1: i32) -> (i32, i32, i32) {
    %c0_i32 = arith.constant 0 : i32
    %c0_i32_0 = arith.constant 0 : i32
    %c0_i32_1 = arith.constant 0 : i32
    return %arg1, %c0_i32, %c0_i32_0 : i32, i32, i32
  }
  func.func @transform_4(%arg0: i32, %arg1: i32) -> (i32, i32, i32) {
    %c0_i32 = arith.constant 0 : i32
    %c0_i32_0 = arith.constant 0 : i32
    %c0_i32_1 = arith.constant 0 : i32
    return %arg1, %c0_i32, %c0_i32_0 : i32, i32, i32
  }
  func.func @transform_5(%arg0: i32, %arg1: i32) -> (i32, i32, i32) {
    %c0_i32 = arith.constant 0 : i32
    %c0_i32_0 = arith.constant 0 : i32
    %c0_i32_1 = arith.constant 0 : i32
    return %arg1, %c0_i32, %c0_i32_0 : i32, i32, i32
  }
  func.func @transform_6(%arg0: i32, %arg1: i32) -> (i32, i32, i32) {
    %c0_i32 = arith.constant 0 : i32
    %c0_i32_0 = arith.constant 0 : i32
    %c0_i32_1 = arith.constant 0 : i32
    return %arg1, %c0_i32, %c0_i32_0 : i32, i32, i32
  }
  func.func @transform_7(%arg0: i32, %arg1: i32) -> (i32, i32, i32) {
    %c0_i32 = arith.constant 0 : i32
    %c0_i32_0 = arith.constant 0 : i32
    %c0_i32_1 = arith.constant 0 : i32
    return %arg1, %c0_i32, %c0_i32_0 : i32, i32, i32
  }
  func.func @transform_8(%arg0: i32, %arg1: i32) -> (i32, i32, i32) {
    %c0_i32 = arith.constant 0 : i32
    %c0_i32_0 = arith.constant 0 : i32
    %c0_i32_1 = arith.constant 0 : i32
    return %arg1, %c0_i32, %c0_i32_0 : i32, i32, i32
  }
  func.func @transform_9(%arg0: i32, %arg1: i32) -> (i32, i32, i32) {
    %c0_i32 = arith.constant 0 : i32
    %c0_i32_0 = arith.constant 0 : i32
    %c0_i32_1 = arith.constant 0 : i32
    return %arg1, %c0_i32, %c0_i32_0 : i32, i32, i32
  }
  func.func @transform_10(%arg0: i32, %arg1: i32) -> (i32, i32, i32) {
    %c0_i32 = arith.constant 0 : i32
    %c0_i32_0 = arith.constant 0 : i32
    %c0_i32_1 = arith.constant 0 : i32
    return %arg1, %c0_i32, %c0_i32_0 : i32, i32, i32
  }
  func.func @transform_11(%arg0: i32, %arg1: i32) -> (i32, i32, i32) {
    %c0_i32 = arith.constant 0 : i32
    %c0_i32_0 = arith.constant 0 : i32
    %c0_i32_1 = arith.constant 0 : i32
    return %arg1, %c0_i32, %c0_i32_0 : i32, i32, i32
  }
  func.func @transform_12(%arg0: i32, %arg1: i32) -> (i32, i32, i32) {
    %c0_i32 = arith.constant 0 : i32
    %c0_i32_0 = arith.constant 0 : i32
    %c0_i32_1 = arith.constant 0 : i32
    return %arg1, %c0_i32, %c0_i32_0 : i32, i32, i32
  }
  func.func @transform_13(%arg0: i32, %arg1: i32) -> (i32, i32, i32) {
    %c0_i32 = arith.constant 0 : i32
    %c0_i32_0 = arith.constant 0 : i32
    %c0_i32_1 = arith.constant 0 : i32
    return %arg0, %c0_i32, %c0_i32_0 : i32, i32, i32
  }
}

</mosaic_0001>

<bundles_post_ra>
// kernel: mae_forward.5
= control target key start
LH: loop header
LB: loop body
LE: loop exit
PB: predicated region body
PF: predicated region fallthrough
CT: control target
= control target key end

     0   :  { %s457_s15 = smov 0   ;;  %s498_s0 = inlined_call_operand.vmem [shape: f32[2,4,48], index: 0, kind: input, shape index: {}]   ;;  %s499_s1 = inlined_call_operand.vmem [shape: f32[48,32], index: 1, kind: input, shape index: {}]   ;;  %s500_s2 = inlined_call_operand.vmem [shape: f32[1,32], index: 2, kind: input, shape index: {}]   ;;  %s501_s3 = inlined_call_operand.vmem [shape: f32[2,4,32], index: 3, kind: input, shape index: {}]   ;;  %s502_s4 = inlined_call_operand.vmem [shape: f32[2,4,32], index: 4, kind: output, shape index: {}]  }
   0x1 LB: > { %s367_s16 = sadd.s32 4294967295, %s427_s15   ;;  %p371_p0 = scmp.ge.s32.totalorder %s427_s15, 1  ;;  %s427_s15 = sphi %s457_s15, %s14_s15  }
   0x2   : > { %p170_p1 = scmp.lt.s32.totalorder %s427_s15, 3 }
   0x4   : > { %p171_p2 = pnand %p371_p0, %p170_p1 }
   0x5   : > { %v211_v0 = vld [vmem:[%s499_s1] sm:$0xff] (!%p171_p2)  ;;  %v212_v1 = vld [vmem:[%s499_s1 + $0x8] sm:$0xff] (!%p171_p2)  ;;  %v213_v2 = vld [vmem:[%s499_s1 + $0x10] sm:$0xff] (!%p171_p2)  ;;  %v429_v3 = vmov (!%p171_p2), 0.0|0.0   ;;  %vm430_vm0 = vmmov (!%p171_p2), 0   ;;  %v431_v6 = vmov (!%p171_p2), 0.0  }
   0x6   : > { %174 = sbr.rel (%p171_p2) target bundleno = 236 (0xec), region = 36  ;;  %401 = vmatprep.subr.bf16.mxu0 (!%p171_p2), %v429_v3  ;;  %v402_v4 = vpack.c.bf16 (!%p171_p2), %v212_v1, %v211_v0  ;;  %v214_v5 = vld [vmem:[%s499_s1 + $0x18] sm:$0xff] (!%p171_p2)  ;;  %398 = vmatprep.mubr.msk.f32.mxu0 (!%p171_p2), %vm430_vm0, %v431_v6  ;;  %p198_p3 = scmp.lt.s32.totalorder (!%p171_p2), %s367_s16, 1  ;;  %v215_v8 = vld [vmem:[%s499_s1 + $0x20] sm:$0xff] (!%p171_p2)  ;;  %v216_v9 = vld [vmem:[%s499_s1 + $0x28] sm:$0xff] (!%p171_p2)  ;;  %vm224_vm1 = vcmask (!%p171_p2), 392192  }
   0x7   : > { %v405_v7 = vpack.c.bf16 (!%p171_p2), %v214_v5, %v213_v2  ;;  %v408_v10 = vpack.c.bf16 (!%p171_p2), %v216_v9, %v215_v8  ;;  %v375_v12 = vld [vmem:[%s500_s2] ss:$0 sm:$0xff] (!%p171_p2)  ;;  %vm300_vm2 = vcmask (!%p171_p2), 257024  }
   0x8   : > { %403 = vmatpush3.bf16.msra.mxu0 (!%p171_p2), %v402_v4 }
   0x9   : > { %404 = vmatprep.subr.bf16.mxu0 (!%p171_p2), %v429_v3 }
   0xc   : > { %406 = vmatpush3.bf16.msra.mxu0 (!%p171_p2), %v405_v7 }
   0xd   : > { %s504_s16 = smov (!%p198_p3, %s367_s16), 1  ;;  %407 = vmatprep.subr.bf16.mxu0 %v429_v3 }
   0xe   : > { %s372_s29 = sshll.u32 %s504_s16, 2 }
   0xf   : > { %s201_s6 = scalar_lea.vmem %s498_s0, %s372_s29  ;;  %s205_s9 = scalar_lea.vmem %s501_s3, %s372_s29 }
  0x10   : > { %409 = vmatpush3.bf16.msra.mxu0 %v408_v10  ;;  %v210_v11 = vld [vmem:[%s201_s6] sm:$0xf]  ;;  %s209_s14 = scalar_lea.vmem %s502_s4, %s372_s29 }
  0x11   : > { %v298_v14 = vld [vmem:[%s205_s9] sm:$0xf] }
  0x13   : > { %399 = vmatmul.mubr.msk.f32.vlgmr.msra.gmra.mrb[0].mxu0 %vm224_vm1, %v210_v11 }
  0xe6   : > { %v294_v13 = vpop.f32.mrb[0].mxu0 }
  0xe7   : > { %v295_v15 = vadd.f32 %v375_v12, %v294_v13  ;;  %v400_v16 = vpop.f32.mrb[1].mxu0 }
  0xe9   : > { %v299_v17 = vadd.f32 %v298_v14, %v295_v15 }
  0xeb   : > { %301 = vst.msk [vmem:[%s209_s14] sm:$0xf] %vm300_vm2, %v299_v17 }
  0xec PF: > { %s14_s15 = sadd.s32 1, %s427_s15  }
  0xed   : > { %p11_p4 = scmp.ge.s32.totalorder %s14_s15, 4  }
  0xef   :  { %13 = sbr.rel (!%p11_p4) target bundleno = 1 (0x1), region = 69 }

// kernel: mae_forward.7
= control target key start
LH: loop header
LB: loop body
LE: loop exit
PB: predicated region body
PF: predicated region fallthrough
CT: control target
= control target key end

     0   :  { %s382_s12 = smov 0   ;;  %s414_s0 = inlined_call_operand.vmem [shape: f32[2,4,32], index: 0, kind: input, shape index: {}]   ;;  %s415_s1 = inlined_call_operand.vmem [shape: f32[32,64], index: 1, kind: input, shape index: {}]   ;;  %s416_s2 = inlined_call_operand.vmem [shape: f32[1,64], index: 2, kind: input, shape index: {}]   ;;  %s417_s3 = inlined_call_operand.vmem [shape: f32[2,4,64], index: 3, kind: output, shape index: {}]  }
   0x1 LB: > { %s307_s13 = sadd.s32 4294967295, %s357_s12   ;;  %p311_p0 = scmp.ge.s32.totalorder %s357_s12, 1  ;;  %s357_s12 = sphi %s382_s12, %s13_s12  }
   0x2   : > { %p136_p1 = scmp.lt.s32.totalorder %s357_s12, 3 }
   0x4   : > { %p137_p2 = pnand %p311_p0, %p136_p1 }
   0x5   : > { %v167_v0 = vld [vmem:[%s415_s1] sm:$0xff] (!%p137_p2)  ;;  %v168_v1 = vld [vmem:[%s415_s1 + $0x8] sm:$0xff] (!%p137_p2)  ;;  %v169_v2 = vld [vmem:[%s415_s1 + $0x10] sm:$0xff] (!%p137_p2)  ;;  %v359_v3 = vmov (!%p137_p2), 0.0|0.0   ;;  %vm360_vm0 = vmmov (!%p137_p2), 0   ;;  %v361_v6 = vmov (!%p137_p2), 0.0  }
   0x6   : > { %140 = sbr.rel (%p137_p2) target bundleno = 232 (0xe8), region = 32  ;;  %334 = vmatprep.subr.bf16.mxu0 (!%p137_p2), %v359_v3  ;;  %v335_v4 = vpack.c.bf16 (!%p137_p2), %v168_v1, %v167_v0  ;;  %v170_v5 = vld [vmem:[%s415_s1 + $0x18] sm:$0xff] (!%p137_p2)  ;;  %331 = vmatprep.mubr.msk.f32.mxu0 (!%p137_p2), %vm360_vm0, %v361_v6  ;;  %p158_p3 = scmp.lt.s32.totalorder (!%p137_p2), %s307_s13, 1  ;;  %vm178_vm1 = vcmask (!%p137_p2), 261120   ;;  %v314_v9 = vld [vmem:[%s416_s2] ss:$0 sm:$0xff] (!%p137_p2) }
   0x7   : > { %v338_v7 = vpack.c.bf16 (!%p137_p2), %v170_v5, %v169_v2  ;;  %vm252_vm2 = vcmask (!%p137_p2), 519168  }
   0x8   : > { %336 = vmatpush3.bf16.msra.mxu0 (!%p137_p2), %v335_v4 }
   0x9   : > { %337 = vmatprep.subr.bf16.mxu0 (!%p137_p2), %v359_v3 }
   0xc   : > { %339 = vmatpush3.bf16.msra.mxu0 (!%p137_p2), %v338_v7 }
   0xd   : > { %s419_s13 = smov (!%p158_p3, %s307_s13), 1 }
   0xe   : > { %s312_s22 = sshll.u32 %s419_s13, 2 }
   0xf   : > { %s161_s25 = scalar_lea.vmem %s414_s0, %s312_s22  ;;  %s165_s30 = scalar_lea.vmem %s417_s3, %s312_s22 }
  0x10   : > { %v166_v8 = vld [vmem:[%s161_s25] sm:$0xf] }
  0x11   : > { %332 = vmatmul.mubr.msk.f32.vlgmr.msra.gmra.mrb[0].mxu0 %vm178_vm1, %v166_v8 }
  0xe4   : > { %v248_v10 = vpop.f32.mrb[0].mxu0 }
  0xe5   : > { %v249_v11 = vadd.f32 %v314_v9, %v248_v10  ;;  %v333_v12 = vpop.f32.mrb[1].mxu0 }
  0xe7   : > { %253 = vst.msk [vmem:[%s165_s30] sm:$0xf] %vm252_vm2, %v249_v11 }
  0xe8 PF: > { %s13_s12 = sadd.s32 1, %s357_s12  }
  0xe9   : > { %p10_p4 = scmp.ge.s32.totalorder %s13_s12, 4  }
  0xeb   :  { %12 = sbr.rel (!%p10_p4) target bundleno = 1 (0x1), region = 62 }

// kernel: mae_forward.6
= control target key start
LH: loop header
LB: loop body
LE: loop exit
PB: predicated region body
PF: predicated region fallthrough
CT: control target
= control target key end

     0   :  { %s2399_s25 = smov 0   ;;  %s2401_s26 = smov 0   ;;  %s2687_s0 = inlined_call_operand.vmem [shape: f32[2,4,32], index: 0, kind: input, shape index: {}]   ;;  %s2688_s1 = inlined_call_operand.vmem [shape: f32[2,1,32], index: 1, kind: input, shape index: {}]   ;;  %s2689_s2 = inlined_call_operand.vmem [shape: f32[2,1,32], index: 2, kind: input, shape index: {}]   ;;  %s2690_s3 = inlined_call_operand.vmem [shape: f32[2,32,96], index: 3, kind: input, shape index: {}]   ;;  %s2691_s4 = inlined_call_operand.vmem [shape: f32[2,1,96], index: 4, kind: input, shape index: {}]   ;;  %s2692_s5 = inlined_call_operand.vmem [shape: f32[2,32,32], index: 5, kind: input, shape index: {}]   ;;  %s2693_s6 = inlined_call_operand.vmem [shape: f32[2,1,32], index: 6, kind: input, shape index: {}]   ;;  %s2694_s7 = inlined_call_operand.vmem [shape: f32[2,1,32], index: 7, kind: input, shape index: {}]   ;;  %s2695_s8 = inlined_call_operand.vmem [shape: f32[2,1,32], index: 8, kind: input, shape index: {}]   ;;  %s2696_s9 = inlined_call_operand.vmem [shape: f32[2,32,128], index: 9, kind: input, shape index: {}]   ;;  %s2697_s10 = inlined_call_operand.vmem [shape: f32[2,1,128], index: 10, kind: input, shape index: {}]   ;;  %s2698_s11 = inlined_call_operand.vmem [shape: f32[2,128,32], index: 11, kind: input, shape index: {}]   ;;  %s2699_s12 = inlined_call_operand.vmem [shape: f32[2,1,32], index: 12, kind: input, shape index: {}]   ;;  %s2700_s13 = inlined_call_operand.vmem [shape: f32[2,4,32], index: 13, kind: output, shape index: {}]  }
   0x1   :  { %2705 = sst [smem:[#allocation9_spill]] %s2687_s0  ;;  %s2403_s27 = smov 0  }
   0x2   :  { %2706 = sst [smem:[#allocation10_spill]] %s2689_s2  ;;  %s2405_s28 = smov 0  }
   0x3   :  { %2707 = sst [smem:[#allocation11_spill]] %s2690_s3  ;;  %s2407_s29 = smov 0  }
   0x4   :  { %2708 = sst [smem:[#allocation12_spill]] %s2692_s5 }
   0x5   :  { %2709 = sst [smem:[#allocation13_spill]] %s2700_s13 }
   0x6 LB: > { %2710 = sst [smem:[#allocation3_spill]] %s2294_s25  ;;  %s32_s30 = sadd.s32 1, %s2302_s27  ;;  %s2310_s29 = sphi %s2407_s29, %s23_s29   ;;  %s2306_s28 = sphi %s2405_s28, %s2734_s28   ;;  %s2302_s27 = sphi %s2403_s27, %s2733_s27   ;;  %s2298_s26 = sphi %s2401_s26, %s2732_s26   ;;  %s2294_s25 = sphi %s2399_s25, %s2731_s25  }
   0x7   : > { %2711 = sst [smem:[#allocation4_spill]] %s2302_s27  ;;  %s35_s14 = sadd.s32 1, %s2306_s28 }
   0x8   : > { %2712 = sst [smem:[#allocation5_spill]] %s2306_s28  ;;  %p33_p0 = scmp.ge.s32.totalorder %s32_s30, 2 }
   0x9   : > { %2713 = sst [smem:[#allocation6_spill]] %s2310_s29  ;;  %p1949_p1 = scmp.ge.s32.totalorder %s2310_s29, 1 }
   0xa   : > { %p502_p2 = scmp.lt.s32.totalorder %s2310_s29, 5  ;;  %s2736_s30 = smov (%p33_p0, %s32_s30), 0 }
   0xb   : > { %2714 = sst [smem:[#allocation7_spill]] %s2736_s30  ;;  %s2738_s14 = smov (!%p33_p0, %s35_s14), %s2306_s28 }
   0xc   : > { %p503_p3 = pnand %p1949_p1, %p502_p2  ;;  %p37_p4 = scmp.ge.s32.totalorder %s2738_s14, 2 }
   0xd   : > { %p588_p5 = scmp.lt.s32.totalorder (!%p503_p3), %s2298_s26, 1  ;;  %p592_p6 = scmp.lt.s32.totalorder (!%p503_p3), %s2294_s25, 1 }
   0xe   : > { %s2740_s14 = smov (%p37_p4, %s2738_s14), 0  ;;  %506 = sbr.rel (%p503_p3) target bundleno = 2550 (0x9f6), region = 72 }
   0xf   : > { %2715 = sst [smem:[#allocation8_spill]] %s2740_s14  ;;  %s2716_s0 = sld [smem:[#allocation9_spill]] (!%p503_p3) }
  0x10   : > { %s2718_s3 = sld [smem:[#allocation11_spill]] (!%p503_p3)  ;;  %s2719_s5 = sld [smem:[#allocation12_spill]] (!%p503_p3) }
  0x15   : > { %s2742_s26 = smov (!%p588_p5, %s2298_s26), 1 }
  0x16   : > { %s2433_s15 = scalar_select %p592_p6, %s2294_s25, 1 }
  0x17   : > { %s1950_s16 = sshll.u32 %s2742_s26, 2 }
  0x18   : > { %s591_s19 = scalar_lea.vmem %s2716_s0, %s1950_s16  ;;  %s1991_s30 = sshll.u32 %s2433_s15, 5 }
  0x19   : > { %s2450_s29 = scalar_lea.vmem %s2718_s3, %s1991_s30  ;;  %s2459_s0 = scalar_lea.vmem %s2719_s5, %s1991_s30 }
  0x1a   : > { %s2476_s26 = scalar_lea.vmem %s2696_s9, %s1991_s30  ;;  %s627_s13 = scalar_lea.vmem %s2697_s10, %s2433_s15 }
  0x1b   : > { %s1994_s5 = sshll.u32 %s2433_s15, 7  ;;  %s635_s23 = scalar_lea.vmem %s2699_s12, %s2433_s15 }
  0x1c   : > { %s2490_s22 = scalar_lea.vmem %s2698_s11, %s1994_s5  ;;  %s2720_s3 = sld [smem:[#allocation13_spill]] }
  0x1d   : > { %s2721_s30 = sld [smem:[#allocation3_spill]] }
  0x22   : > { %s2495_s2 = scalar_lea.vmem %s2720_s3, %s1950_s16 }
  0x23   : > { %p1960_p7 = scmp.ne.s32.totalorder %s2721_s30, 0 }
  0x24   : > { %v644_v0 = vld [vmem:[%s591_s19] sm:$0xf] (!%p1960_p7)  ;;  %vm645_vm0 = vcmask (!%p1960_p7), 257024  }
  0x25   : > { %643 = sbr.rel (%p1960_p7) target bundleno = 44 (0x2c), region = 76  ;;  %646 = vst.msk [vmem:[#allocation2] sm:$0xf] (!%p1960_p7), %vm645_vm0, %v644_v0 }
  0x2c PF: > { %v2498_v1 = vld [vmem:[#allocation2] sm:$0xf]  ;;  %vm650_vm1 = vcmask 257024   ;;  %v680_v9 = vld [vmem:[%s2450_s29 + $0x8] sm:$0xff]  ;;  %v681_v10 = vld [vmem:[%s2450_s29 + $0x10] sm:$0xff]  ;;  %v2312_v11 = vmov 0.0|0.0   ;;  %s2725_s21 = scalar_lea.vmem %s2691_s4, %s2433_s15 }
  0x2d   : > { %v651_v2 = vsel %vm650_vm1, %v2498_v1, 0.0  ;;  %v679_v8 = vld [vmem:[%s2450_s29] sm:$0xff]  ;;  %2151 = vmatprep.subr.bf16.mxu1 %v2312_v11  ;;  %v682_v13 = vld [vmem:[%s2450_s29 + $0x18] sm:$0xff]  ;;  %vm2313_vm2 = vmmov 0   ;;  %v2314_v14 = vmov 0.0   ;;  %s2722_s29 = scalar_lea.vmem %s2688_s1, %s2433_s15  ;;  %s2723_s25 = sld [smem:[#allocation10_spill]] }
  0x2e   : > { %652 = vadd.xlane.f32.xlu0 %v651_v2  ;;  %v2152_v12 = vpack.c.bf16 %v680_v9, %v679_v8  ;;  %2051 = vmatprep.mubr.msk.f32.mxu1 %vm2313_vm2, %v2314_v14  ;;  %v2155_v15 = vpack.c.bf16 %v682_v13, %v681_v10  ;;  %v1961_v20 = vld [vmem:[%s2722_s29] ss:$0 sm:$0xff]  ;;  %vm690_vm3 = vcmask 261120   ;;  %s2315_s14 = smov 120   ;;  %s2316_s24 = smov 96   ;;  %vm767_vm4 = vcmask 64512  }
  0x2f   : > { %2064 = vmatprep.subr.mxu0 %v2314_v14  ;;  %2066 = vmatprep.mubr.msk.f32.mxu0 %vm2313_vm2, %v2314_v14  ;;  %v1963_v25 = vld [vmem:[%s2725_s21] ss:$0 sm:$0xff]  ;;  %s2317_s27 = smov 88   ;;  %s2318_s28 = smov 80   ;;  %vm843_vm5 = vcmask 27648   ;;  %vm861_vm6 = vcmask 1043456  }
  0x30   : > { %2153 = vmatpush3.bf16.msra.mxu1 %v2152_v12  ;;  %s2319_s30 = smov 112   ;;  %s2320_s3 = smov 72   ;;  %vm857_vm7 = vcmask 31744   ;;  %vm1448_vm8 = vcmask 130048   ;;  %vm1450_vm9 = vcmask 195584  }
  0x31   : > { %2154 = vmatprep.subr.bf16.mxu1 %v2312_v11  ;;  %s2321_s5 = smov 104   ;;  %s2322_s29 = smov 64  }
  0x32   : > { %s2323_s16 = smov 48   ;;  %s2324_s19 = smov 40  }
  0x33   : > { %s2724_s17 = scalar_lea.vmem %s2723_s25, %s2433_s15  ;;  %s2325_s25 = smov 56  }
  0x34   : > { %2156 = vmatpush3.bf16.msra.mxu1 %v2155_v15  ;;  %v1962_v22 = vld [vmem:[%s2724_s17] ss:$0 sm:$0xff]  ;;  %s2326_s17 = smov 8   ;;  %s2327_s18 = smov 16  }
  0x35   : > { %2054 = vmatprep.subr.mxu1 %v2314_v14  ;;  %s2328_s20 = smov 24  }
  0xbb   : > { %v653_v3 = vpop.xlane.xlu0 %652 }
  0xbc   : > { %v655_v4 = vmul.f32 0.03125, %v653_v3 }
  0xbe   : > { %v656_v5 = vsub.f32 %v2498_v1, %v655_v4 }
  0xc0   : > { %v657_v6 = vmul.f32 %v656_v5, %v656_v5 }
  0xc2   : > { %v658_v7 = vsel %vm650_vm1, %v657_v6, 0.0 }
  0xc3   : > { %659 = vadd.xlane.f32.xlu0 %v658_v7 }
 0x150   : > { %v660_v16 = vpop.xlane.xlu0 %659 }
 0x151   : > { %v661_v17 = vmul.f32 0.03125, %v660_v16 }
 0x153   : > { %v662_v18 = vadd.f32 1e-05, %v661_v17 }
 0x155   : > { %2250 = vrsqrt.f32 %v662_v18 }
 0x15f   : > { %v2251_v19 = vpop.eup %2250 }
 0x160   : > { %v664_v21 = vmul.f32 %v2251_v19, %v656_v5 }
 0x162   : > { %v671_v23 = vmul.f32 %v1961_v20, %v664_v21 }
 0x164   : > { %v678_v24 = vadd.f32 %v1962_v22, %v671_v23 }
 0x166   : > { %2052 = vmatmul.mubr.msk.f32.vlgmr.msra.gmra.mrb[0].mxu1 %vm690_vm3, %v678_v24 }
 0x167   : > { %2056 = vmatprep.mubr.msk.f32.mxu1 %vm2313_vm2, %v2314_v14 }
 0x239   : > { %v760_v26 = vpop.f32.mrb[0].mxu1 }
 0x23a   : > { %v2534_v27 = vadd.f32 %v1963_v25, %v760_v26  ;;  %v2053_v28 = vpop.f32.mrb[1].mxu1 }
 0x23b   : > { %v1453_v28 = vld [vmem:[%s2459_s0 + $0x8] sm:$0xff] }
 0x23c   : > { %934 = vrot.lane.b32.xlu0 %v2534_v27, %s2315_s14  ;;  %765 = vrot.lane.b32.xlu1 %v2534_v27, %s2316_s24  ;;  %s2726_s14 = scalar_lea.vmem %s2693_s6, %s2433_s15 }
 0x240   : > { %936 = vrot.lane.b32.xlu1 %v2534_v27, %s2317_s27 }
 0x244   : > { %1103 = vrot.lane.b32.xlu1 %v2534_v27, %s2318_s28 }
 0x248   : > { %1101 = vrot.lane.b32.xlu1 %v2534_v27, %s2319_s30 }
 0x24c   : > { %1270 = vrot.lane.b32.xlu1 %v2534_v27, %s2320_s3  ;;  %s2728_s3 = scalar_lea.vmem %s2695_s8, %s2433_s15 }
 0x250   : > { %1268 = vrot.lane.b32.xlu1 %v2534_v27, %s2321_s5 }
 0x2ae   : > { %v766_v29 = vpop.permute.xlu1 %765  ;;  %v935_v31 = vpop.permute.xlu0 %934 }
 0x2af   : > { %2055 = vmatpush3.xpose.msk.msra.mxu1 %vm767_vm4, %v766_v29 }
 0x2b0   : > { %2059 = vmatprep.subr.mxu1 %v2314_v14 }
 0x2b2   : > { %2057 = vmatmul.mubr.msk.f32.vlgmr.msra.gmra.mrb[2].mxu1 %vm767_vm4, %v2534_v27  ;;  %v937_v30 = vpop.permute.xlu1 %936 }
 0x2b3   : > { %2065 = vmatpush3.xpose.msk.msra.mxu0 %vm767_vm4, %v937_v30  ;;  %2061 = vmatprep.mubr.msk.f32.mxu1 %vm2313_vm2, %v2314_v14 }
 0x2b4   : > { %2074 = vmatprep.subr.mxu0 %v2314_v14 }
 0x2b6   : > { %2067 = vmatmul.mubr.msk.f32.vlgmr.msra.gmra.mrb[0].mxu0 %vm767_vm4, %v935_v31  ;;  %v1104_v32 = vpop.permute.xlu1 %1103 }
 0x2b7   : > { %2075 = vmatpush3.xpose.msk.msra.mxu0 %vm767_vm4, %v1104_v32  ;;  %2076 = vmatprep.mubr.msk.f32.mxu0 %vm2313_vm2, %v2314_v14  ;;  %v1454_v32 = vld [vmem:[%s2459_s0 + $0x10] sm:$0xff] }
 0x2b8   : > { %2084 = vmatprep.subr.mxu0 %v2314_v14 }
 0x2ba   : > { %v1102_v33 = vpop.permute.xlu1 %1101 }
 0x2bb   : > { %2077 = vmatmul.mubr.msk.f32.vlgmr.msra.gmra.mrb[2].mxu0 %vm767_vm4, %v1102_v33  ;;  %v1455_v33 = vld [vmem:[%s2459_s0 + $0x18] sm:$0xff] }
 0x2bc   : > { %2086 = vmatprep.mubr.msk.f32.mxu0 %vm2313_vm2, %v2314_v14 }
 0x2be   : > { %v1271_v34 = vpop.permute.xlu1 %1270 }
 0x2bf   : > { %2085 = vmatpush3.xpose.msk.msra.mxu0 %vm767_vm4, %v1271_v34  ;;  %v2161_v34 = vpack.c.bf16 %v1455_v33, %v1454_v32  ;;  %v1675_v32 = vld [vmem:[%s2490_s22 + $0x78] sm:$0xff] }
 0x2c0   : > { %2169 = vmatprep.subr.bf16.mxu0 %v2312_v11 }
 0x2c2   : > { %v1269_v35 = vpop.permute.xlu1 %1268 }
 0x2c3   : > { %2087 = vmatmul.mubr.msk.f32.vlgmr.msra.gmra.mrb[4].mxu0 %vm767_vm4, %v1269_v35 }
 0x2c4   : > { %2148 = vmatprep.mubr.msk.f32.mxu0 %vm2313_vm2, %v2314_v14 }
 0x385   : > { %v838_v36 = vpop.f32.mrb[2].mxu1 }
 0x386   : > { %v842_v37 = vmul.f32 0.35355338, %v838_v36  ;;  %v2058_v38 = vpop.f32.mrb[3].mxu1 }
 0x388   : > { %v844_v39 = vsel %vm843_vm5, %v842_v37, -inf }
 0x389   : > { %v1008_v40 = vpop.f32.mrb[0].mxu0  ;;  %845 = vmax.xlane.f32.xlu1 %v844_v39 }
 0x38a   : > { %v1012_v41 = vmul.f32 0.35355338, %v1008_v40  ;;  %v2068_v42 = vpop.f32.mrb[1].mxu0 }
 0x38c   : > { %v1013_v43 = vsel %vm843_vm5, %v1012_v41, -inf }
 0x38d   : > { %1014 = vmax.xlane.f32.xlu0 %v1013_v43 }
 0x38e   : > { %v1175_v44 = vpop.f32.mrb[2].mxu0 }
 0x38f   : > { %v1179_v45 = vmul.f32 0.35355338, %v1175_v44  ;;  %v2078_v46 = vpop.f32.mrb[3].mxu0 }
 0x391   : > { %v1180_v47 = vsel %vm843_vm5, %v1179_v45, -inf }
 0x392   : > { %1181 = vmax.xlane.f32.xlu1 %v1180_v47 }
 0x396   : > { %v1342_v48 = vpop.f32.mrb[4].mxu0 }
 0x397   : > { %v1346_v49 = vmul.f32 0.35355338, %v1342_v48  ;;  %v2088_v50 = vpop.f32.mrb[5].mxu0  ;;  %v1982_v48 = vld [vmem:[%s2726_s14] ss:$0 sm:$0xff] }
 0x399   : > { %v1347_v51 = vsel %vm843_vm5, %v1346_v49, -inf }
 0x39a   : > { %1348 = vmax.xlane.f32.xlu0 %v1347_v51 }
 0x3a3   : > { %855 = vrot.lane.b32.xlu1 %v2534_v27, %s2322_s29 }
 0x416   : > { %v846_v52 = vpop.xlane.xlu1 %845 }
 0x417   : > { %v847_v53 = vsub.f32 %v842_v37, %v846_v52 }
 0x419   : > { %v848_v54 = vmul.f32 1.442695, %v847_v53 }
 0x41a   : > { %v1015_v55 = vpop.xlane.xlu0 %1014 }
 0x41b   : > { %2252 = vpow2.f32 %v848_v54  ;;  %v1016_v56 = vsub.f32 %v1012_v41, %v1015_v55 }
 0x41d   : > { %v1017_v57 = vmul.f32 1.442695, %v1016_v56 }
 0x41f   : > { %2254 = vpow2.f32 %v1017_v57  ;;  %v1182_v58 = vpop.xlane.xlu1 %1181  ;;  %v1568_v57 = vld [vmem:[%s2476_s26 + $0x8] sm:$0xff] }
 0x420   : > { %v1183_v59 = vsub.f32 %v1179_v45, %v1182_v58 }
 0x422   : > { %v1184_v60 = vmul.f32 1.442695, %v1183_v59  ;;  %v1569_v59 = vld [vmem:[%s2476_s26 + $0x10] sm:$0xff] }
 0x423   : > { %v856_v61 = vpop.permute.xlu1 %855 }
 0x424   : > { %2256 = vpow2.f32 %v1184_v60  ;;  %2060 = vmatpush3.msk.msra.mxu1 %vm861_vm6, %v856_v61  ;;  %v1570_v60 = vld [vmem:[%s2476_s26 + $0x18] sm:$0xff] }
 0x425   : > { %v2253_v62 = vpop.eup %2252  ;;  %2069 = vmatprep.subr.mxu1 %v2314_v14  ;;  %v2167_v61 = vpack.c.bf16 %v1570_v60, %v1569_v59 }
 0x426   : > { %v850_v63 = vsel %vm843_vm5, %v2253_v62, 0.0 }
 0x427   : > { %v1349_v0 = vpop.xlane.xlu0 %1348  ;;  %851 = vadd.xlane.f32.xlu1 %v850_v63  ;;  %v1661_v63 = vld [vmem:[%s2490_s22 + $0x8] sm:$0xff] }
 0x428   : > { %v1350_v2 = vsub.f32 %v1346_v49, %v1349_v0 }
 0x429   : > { %v2255_v3 = vpop.eup %2254 }
 0x42a   : > { %v1351_v4 = vmul.f32 1.442695, %v1350_v2  ;;  %v1019_v5 = vsel %vm843_vm5, %v2255_v3, 0.0 }
 0x42b   : > { %1020 = vadd.xlane.f32.xlu0 %v1019_v5 }
 0x42c   : > { %2258 = vpow2.f32 %v1351_v4 }
 0x42e   : > { %v2257_v6 = vpop.eup %2256 }
 0x42f   : > { %v1186_v7 = vsel %vm843_vm5, %v2257_v6, 0.0 }
 0x430   : > { %1187 = vadd.xlane.f32.xlu1 %v1186_v7 }
 0x436   : > { %v2259_v8 = vpop.eup %2258 }
 0x437   : > { %v1353_v9 = vsel %vm843_vm5, %v2259_v8, 0.0 }
 0x438   : > { %1354 = vadd.xlane.f32.xlu0 %v1353_v9 }
 0x441   : > { %1191 = vrot.lane.b32.xlu1 %v2534_v27, %s2323_s16 }
 0x445   : > { %1358 = vrot.lane.b32.xlu1 %v2534_v27, %s2324_s19 }
 0x44e   : > { %1024 = vrot.lane.b32.xlu0 %v2534_v27, %s2325_s25  ;;  %v1452_v27 = vld [vmem:[%s2459_s0] sm:$0xff] }
 0x44f   : > { %v2158_v29 = vpack.c.bf16 %v1453_v28, %v1452_v27  ;;  %v1672_v28 = vld [vmem:[%s2490_s22 + $0x60] sm:$0xff] }
 0x4b4   : > { %v852_v10 = vpop.xlane.xlu1 %851 }
 0x4b5   : > { %2260 = vrcp.f32 %v852_v10 }
 0x4b8   : > { %v1021_v12 = vpop.xlane.xlu0 %1020 }
 0x4b9   : > { %2262 = vrcp.f32 %v1021_v12  ;;  %v1662_v12 = vld [vmem:[%s2490_s22 + $0x10] sm:$0xff] }
 0x4bd   : > { %v1188_v13 = vpop.xlane.xlu1 %1187 }
 0x4be   : > { %2264 = vrcp.f32 %v1188_v13  ;;  %v1663_v13 = vld [vmem:[%s2490_s22 + $0x18] sm:$0xff] }
 0x4bf   : > { %v2261_v15 = vpop.eup %2260 }
 0x4c0   : > { %v854_v16 = vmul.f32 %v2261_v15, %v2253_v62  ;;  %v1660_v62 = vld [vmem:[%s2490_s22] sm:$0xff]  ;;  %v2173_v15 = vpack.c.bf16 %v1663_v13, %v1662_v12 }
 0x4c1   : > { %v1192_v20 = vpop.permute.xlu1 %1191  ;;  %v2170_v0 = vpack.c.bf16 %v1661_v63, %v1660_v62 }
 0x4c2   : > { %2062 = vmatmul.mubr.msk.f32.vlgmr.msra.gmra.mrb[4].mxu1 %vm857_vm7, %v854_v16  ;;  %v1664_v16 = vld [vmem:[%s2490_s22 + $0x20] sm:$0xff] }
 0x4c3   : > { %2071 = vmatprep.mubr.msk.f32.mxu1 %vm2313_vm2, %v2314_v14  ;;  %v2263_v18 = vpop.eup %2262  ;;  %2171 = vmatpush3.bf16.msra.mxu0 %v2170_v0 }
 0x4c4   : > { %v1023_v19 = vmul.f32 %v2263_v18, %v2255_v3  ;;  %2172 = vmatprep.subr.bf16.mxu0 %v2312_v11 }
 0x4c5   : > { %v1355_v17 = vpop.xlane.xlu0 %1354  ;;  %v1359_v24 = vpop.permute.xlu1 %1358 }
 0x4c6   : > { %2266 = vrcp.f32 %v1355_v17  ;;  %v1665_v17 = vld [vmem:[%s2490_s22 + $0x28] sm:$0xff] }
 0x4c7   : > { %2174 = vmatpush3.bf16.msra.mxu0 %v2173_v15  ;;  %v2176_v18 = vpack.c.bf16 %v1665_v17, %v1664_v16 }
 0x4c8   : > { %v2265_v22 = vpop.eup %2264  ;;  %2175 = vmatprep.subr.bf16.mxu0 %v2312_v11 }
 0x4c9   : > { %v1025_v21 = vpop.permute.xlu0 %1024  ;;  %v1190_v23 = vmul.f32 %v2265_v22, %v2257_v6  ;;  %v1668_v22 = vld [vmem:[%s2490_s22 + $0x40] sm:$0xff] }
 0x4ca   : > { %2070 = vmatpush3.msk.msra.mxu1 %vm861_vm6, %v1025_v21 }
 0x4cb   : > { %2072 = vmatmul.mubr.msk.f32.vlgmr.msra.gmra.mrb[6].mxu1 %vm857_vm7, %v1023_v19  ;;  %2079 = vmatprep.subr.mxu1 %v2314_v14  ;;  %v1666_v19 = vld [vmem:[%s2490_s22 + $0x30] sm:$0xff] }
 0x4cc   : > { %2080 = vmatpush3.msk.msra.mxu1 %vm861_vm6, %v1192_v20  ;;  %2081 = vmatprep.mubr.msk.f32.mxu1 %vm2313_vm2, %v2314_v14  ;;  %v1667_v20 = vld [vmem:[%s2490_s22 + $0x38] sm:$0xff] }
 0x4cd   : > { %2089 = vmatprep.subr.mxu1 %v2314_v14  ;;  %2177 = vmatpush3.bf16.msra.mxu0 %v2176_v18  ;;  %v2179_v21 = vpack.c.bf16 %v1667_v20, %v1666_v19 }
 0x4ce   : > { %2178 = vmatprep.subr.bf16.mxu0 %v2312_v11 }
 0x4cf   : > { %2082 = vmatmul.mubr.msk.f32.vlgmr.msra.gmra.mrb[8].mxu1 %vm857_vm7, %v1190_v23  ;;  %v1669_v23 = vld [vmem:[%s2490_s22 + $0x48] sm:$0xff] }
 0x4d0   : > { %v2267_v25 = vpop.eup %2266  ;;  %2090 = vmatpush3.msk.msra.mxu1 %vm861_vm6, %v1359_v24  ;;  %2091 = vmatprep.mubr.msk.f32.mxu1 %vm2313_vm2, %v2314_v14  ;;  %v1670_v24 = vld [vmem:[%s2490_s22 + $0x50] sm:$0xff] }
 0x4d1   : > { %v1357_v26 = vmul.f32 %v2267_v25, %v2259_v8  ;;  %2157 = vmatprep.subr.bf16.mxu1 %v2312_v11  ;;  %v1984_v8 = vld [vmem:[%s2728_s3] ss:$0 sm:$0xff]  ;;  %2180 = vmatpush3.bf16.msra.mxu0 %v2179_v21  ;;  %v2182_v25 = vpack.c.bf16 %v1669_v23, %v1668_v22 }
 0x4d2   : > { %2181 = vmatprep.subr.bf16.mxu0 %v2312_v11 }
 0x4d3   : > { %2092 = vmatmul.mubr.msk.f32.vlgmr.msra.gmra.mrb[10].mxu1 %vm857_vm7, %v1357_v26  ;;  %v1671_v26 = vld [vmem:[%s2490_s22 + $0x58] sm:$0xff] }
 0x4d4   : > { %2102 = vmatprep.mubr.msk.f32.mxu1 %vm2313_vm2, %v2314_v14  ;;  %2159 = vmatpush3.bf16.msra.mxu1 %v2158_v29  ;;  %v2185_v27 = vpack.c.bf16 %v1671_v26, %v1670_v24  ;;  %v1673_v29 = vld [vmem:[%s2490_s22 + $0x68] sm:$0xff] }
 0x4d5   : > { %2160 = vmatprep.subr.bf16.mxu1 %v2312_v11  ;;  %2183 = vmatpush3.bf16.msra.mxu0 %v2182_v25 }
 0x4d6   : > { %2184 = vmatprep.subr.bf16.mxu0 %v2312_v11 }
 0x4d8   : > { %2162 = vmatpush3.bf16.msra.mxu1 %v2161_v34  ;;  %v1985_v34 = vld [vmem:[%s627_s13] ss:$0 sm:$0xff]  ;;  %s2729_s13 = sld [smem:[#allocation3_spill]] }
 0x4d9   : > { %2163 = vmatprep.subr.bf16.mxu1 %v2312_v11  ;;  %2186 = vmatpush3.bf16.msra.mxu0 %v2185_v27 }
 0x4da   : > { %2187 = vmatprep.subr.bf16.mxu0 %v2312_v11 }
 0x4de   : > { %p1988_p8 = scmp.ne.s32.totalorder %s2729_s13, 1 }
 0x595   : > { %v930_v30 = vpop.f32.mrb[4].mxu1 }
 0x596   : > { %v2063_v31 = vpop.f32.mrb[5].mxu1 }
 0x597   : > { %v1674_v31 = vld [vmem:[%s2490_s22 + $0x70] sm:$0xff] }
 0x598   : > { %v2191_v33 = vpack.c.bf16 %v1675_v32, %v1674_v31 }
 0x59e   : > { %v1097_v35 = vpop.f32.mrb[6].mxu1 }
 0x59f   : > { %1436 = vrot.lane.b32.xlu0 %v1097_v35, %s2326_s17  ;;  %v2073_v36 = vpop.f32.mrb[7].mxu1 }
 0x5a2   : > { %v1264_v37 = vpop.f32.mrb[8].mxu1 }
 0x5a3   : > { %1440 = vrot.lane.b32.xlu1 %v1264_v37, %s2327_s18  ;;  %v2083_v38 = vpop.f32.mrb[9].mxu1 }
 0x5a6   : > { %v1431_v39 = vpop.f32.mrb[10].mxu1 }
 0x5a7   : > { %1444 = vrot.lane.b32.xlu0 %v1431_v39, %s2328_s20  ;;  %v2093_v40 = vpop.f32.mrb[11].mxu1 }
 0x611   : > { %v1437_v41 = vpop.permute.xlu0 %1436 }
 0x612   : > { %v1447_v43 = vsel %vm767_vm4, %v930_v30, %v1437_v41  ;;  %v2188_v30 = vpack.c.bf16 %v1673_v29, %v1672_v28 }
 0x614   : > { %2189 = vmatpush3.bf16.msra.mxu0 %v2188_v30 }
 0x615   : > { %v1441_v42 = vpop.permute.xlu1 %1440  ;;  %2190 = vmatprep.subr.bf16.mxu0 %v2312_v11 }
 0x616   : > { %v1449_v44 = vsel %vm1448_vm8, %v1447_v43, %v1441_v42 }
 0x618   : > { %2192 = vmatpush3.bf16.msra.mxu0 %v2191_v33 }
 0x619   : > { %v1445_v45 = vpop.permute.xlu0 %1444 }
 0x61a   : > { %v1451_v46 = vsel %vm1450_vm9, %v1449_v44, %v1445_v45 }
 0x61b   : > { %2103 = vmatmul.mubr.msk.f32.vlgmr.msra.gmra.mrb[12].mxu1 %vm690_vm3, %v1451_v46 }
 0x61c   : > { %2113 = vmatprep.mubr.msk.f32.mxu1 %vm2313_vm2, %v2314_v14 }
 0x6ee   : > { %v1525_v47 = vpop.f32.mrb[12].mxu1 }
 0x6ef   : > { %v1529_v49 = vadd.f32 %v1525_v47, %v2498_v1  ;;  %v2104_v50 = vpop.f32.mrb[13].mxu1  ;;  %v1567_v1 = vld [vmem:[%s2476_s26] sm:$0xff]  ;;  %s2727_s26 = scalar_lea.vmem %s2694_s7, %s2433_s15 }
 0x6f0   : > { %v2164_v58 = vpack.c.bf16 %v1568_v57, %v1567_v1  ;;  %v1983_v6 = vld [vmem:[%s2727_s26] ss:$0 sm:$0xff] }
 0x6f1   : > { %v2612_v51 = vadd.f32 %v1982_v48, %v1529_v49  ;;  %v1987_v47 = vld [vmem:[%s635_s23] ss:$0 sm:$0xff] }
 0x6f2   : > { %2165 = vmatpush3.bf16.msra.mxu1 %v2164_v58 }
 0x6f3   : > { %v1540_v52 = vsel %vm650_vm1, %v2612_v51, 0.0  ;;  %2166 = vmatprep.subr.bf16.mxu1 %v2312_v11 }
 0x6f4   : > { %1541 = vadd.xlane.f32.xlu1 %v1540_v52 }
 0x6f6   : > { %2168 = vmatpush3.bf16.msra.mxu1 %v2167_v61 }
 0x781   : > { %v1542_v53 = vpop.xlane.xlu1 %1541 }
 0x782   : > { %v1543_v14 = vmul.f32 0.03125, %v1542_v53 }
 0x784   : > { %v1544_v54 = vsub.f32 %v2612_v51, %v1543_v14 }
 0x786   : > { %v1545_v55 = vmul.f32 %v1544_v54, %v1544_v54 }
 0x788   : > { %v1546_v56 = vsel %vm650_vm1, %v1545_v55, 0.0 }
 0x789   : > { %1547 = vadd.xlane.f32.xlu0 %v1546_v56 }
 0x816   : > { %v1548_v2 = vpop.xlane.xlu0 %1547 }
 0x817   : > { %v1549_v3 = vmul.f32 0.03125, %v1548_v2 }
 0x819   : > { %v1550_v4 = vadd.f32 1e-05, %v1549_v3 }
 0x81b   : > { %2268 = vrsqrt.f32 %v1550_v4 }
 0x825   : > { %v2269_v5 = vpop.eup %2268 }
 0x826   : > { %v1552_v7 = vmul.f32 %v2269_v5, %v1544_v54 }
 0x828   : > { %v1559_v9 = vmul.f32 %v1983_v6, %v1552_v7 }
 0x82a   : > { %v1566_v10 = vadd.f32 %v1984_v8, %v1559_v9 }
 0x82c   : > { %2114 = vmatmul.mubr.msk.f32.vlgmr.msra.gmra.mrb[14].mxu1 %vm690_vm3, %v1566_v10 }
 0x8ff   : > { %v1647_v35 = vpop.f32.mrb[14].mxu1 }
 0x900   : > { %v1648_v36 = vadd.f32 %v1985_v34, %v1647_v35  ;;  %v2115_v37 = vpop.f32.mrb[15].mxu1 }
 0x902   : > { %v1651_v38 = vmul.f32 %v1648_v36, %v1648_v36 }
 0x904   : > { %v1652_v39 = vmul.f32 %v1651_v38, %v1648_v36 }
 0x906   : > { %v1653_v40 = vmul.f32 0.044715, %v1652_v39 }
 0x908   : > { %v1654_v41 = vadd.f32 %v1653_v40, %v1648_v36 }
 0x90a   : > { %v1655_v42 = vmul.f32 0.7978846, %v1654_v41 }
 0x90c   : > { %2270 = vtanh.f32 %v1655_v42 }
 0x916   : > { %v2271_v43 = vpop.eup %2270 }
 0x917   : > { %v1657_v44 = vadd.f32 1.0, %v2271_v43 }
 0x919   : > { %v1658_v45 = vmul.f32 0.5, %v1657_v44 }
 0x91b   : > { %v1659_v11 = vmul.f32 %v1658_v45, %v1648_v36 }
 0x91d   : > { %2149 = vmatmul.mubr.f32.vlgmr.msra.gmra.mrb[6].mxu0 %v1659_v11 }
 0x9ef   : > { %1759 = sbr.rel (%p1988_p8) target bundleno = 2550 (0x9f6), region = 80 }
 0x9f0   : > { %v1742_v46 = vpop.f32.mrb[6].mxu0 }
 0x9f1   : > { %v1746_v48 = vadd.f32 %v1742_v46, %v2612_v51  ;;  %v2150_v49 = vpop.f32.mrb[7].mxu0 }
 0x9f3   : > { %v1754_v50 = vadd.f32 %v1987_v47, %v1746_v48 }
 0x9f5   : > { %1755 = vst.msk [vmem:[#allocation2] sm:$0xf] %vm650_vm1, %v1754_v50  ;;  %1760 = vst.msk [vmem:[%s2495_s2] sm:$0xf] (!%p1988_p8), %vm650_vm1, %v1754_v50 }
 0x9f6 PF: > { %s2730_s19 = sld [smem:[#allocation6_spill]]  ;;  %s2731_s25 = sld [smem:[#allocation4_spill]] }
 0x9f7   : > { %s2732_s26 = sld [smem:[#allocation5_spill]]  ;;  %s2733_s27 = sld [smem:[#allocation7_spill]] }
 0x9f8   : > { %s2734_s28 = sld [smem:[#allocation8_spill]] }
 0x9fc   : > { %s23_s29 = sadd.s32 1, %s2730_s19  }
 0x9fd   : > { %p20_p9 = scmp.ge.s32.totalorder %s23_s29, 6  }
 0x9ff   :  { %22 = sbr.rel (!%p20_p9) target bundleno = 6 (0x6), region = 146 }

// kernel: mae_forward.9
= control target key start
LH: loop header
LB: loop body
LE: loop exit
PB: predicated region body
PF: predicated region fallthrough
CT: control target
= control target key end

     0   :  { %s426_s12 = smov 0   ;;  %s470_s0 = inlined_call_operand.vmem [shape: f32[2,12,64], index: 0, kind: input, shape index: {}]   ;;  %s471_s1 = inlined_call_operand.vmem [shape: f32[64,32], index: 1, kind: input, shape index: {}]   ;;  %s472_s2 = inlined_call_operand.vmem [shape: f32[1,32], index: 2, kind: input, shape index: {}]   ;;  %s473_s3 = inlined_call_operand.vmem [shape: f32[2,12,32], index: 3, kind: output, shape index: {}]  }
   0x1 LB: > { %s329_s13 = sadd.s32 4294967295, %s404_s12   ;;  %p333_p0 = scmp.ge.s32.totalorder %s404_s12, 1  ;;  %s404_s12 = sphi %s426_s12, %s13_s12  }
   0x2   : > { %p137_p1 = scmp.lt.s32.totalorder %s404_s12, 3 }
   0x4   : > { %p138_p2 = pnand %p333_p0, %p137_p1 }
   0x5   : > { %v173_v0 = vld [vmem:[%s471_s1] sm:$0xff] (!%p138_p2)  ;;  %v174_v1 = vld [vmem:[%s471_s1 + $0x8] sm:$0xff] (!%p138_p2)  ;;  %v175_v2 = vld [vmem:[%s471_s1 + $0x10] sm:$0xff] (!%p138_p2)  ;;  %p161_p3 = scmp.lt.s32.totalorder (!%p138_p2), %s329_s13, 1  ;;  %vm188_vm0 = vcmask (!%p138_p2), 523264   ;;  %vm272_vm1 = vcmask (!%p138_p2), 257024  }
   0x6   : > { %141 = sbr.rel (%p138_p2) target bundleno = 240 (0xf0), region = 32  ;;  %v374_v3 = vpack.c.bf16 (!%p138_p2), %v174_v1, %v173_v0  ;;  %v176_v4 = vld [vmem:[%s471_s1 + $0x18] sm:$0xff] (!%p138_p2)  ;;  %v177_v6 = vld [vmem:[%s471_s1 + $0x20] sm:$0xff] (!%p138_p2)  ;;  %v178_v7 = vld [vmem:[%s471_s1 + $0x28] sm:$0xff] (!%p138_p2)  ;;  %vm270_vm2 = vcmask (!%p138_p2), 261120  }
   0x7   : > { %v378_v5 = vpack.c.bf16 (!%p138_p2), %v176_v4, %v175_v2  ;;  %v382_v8 = vpack.c.bf16 (!%p138_p2), %v178_v7, %v177_v6  ;;  %v179_v9 = vld [vmem:[%s471_s1 + $0x30] sm:$0xff] (!%p138_p2)  ;;  %v180_v10 = vld [vmem:[%s471_s1 + $0x38] sm:$0xff] (!%p138_p2)  ;;  %v338_v14 = vld [vmem:[%s472_s2] ss:$0 sm:$0xff] (!%p138_p2) }
   0x8   : > { %375 = vmatprep.subr.bf16.mxu0 (!%p138_p2), %v374_v3  ;;  %v386_v12 = vpack.c.bf16 (!%p138_p2), %v180_v10, %v179_v9 }
   0x9   : > { %377 = vmatpush3.bf16.msra.mxu0 (!%p138_p2), %v374_v3 }
   0xa   : > { %379 = vmatprep.subr.bf16.mxu0 (!%p138_p2), %v378_v5 }
   0xd   : > { %s475_s13 = smov (!%p161_p3, %s329_s13), 1  ;;  %381 = vmatpush3.bf16.msra.mxu0 %v378_v5 }
   0xe   : > { %s343_s26 = sshll.u32 %s475_s13, 4  ;;  %383 = vmatprep.subr.bf16.mxu0 %v382_v8 }
   0xf   : > { %s165_s29 = scalar_lea.vmem %s470_s0, %s343_s26  ;;  %s170_s11 = scalar_lea.vmem %s473_s3, %s343_s26 }
  0x10   : > { %v171_v11 = vld [vmem:[%s165_s29] sm:$0xff]  ;;  %v172_v13 = vld [vmem:[%s165_s29 + $0x8] sm:$0xf] }
  0x11   : > { %371 = vmatprep.mubr.msk.f32.mxu0 %vm188_vm0, %v171_v11  ;;  %385 = vmatpush3.bf16.msra.mxu0 %v382_v8 }
  0x12   : > { %387 = vmatprep.subr.bf16.mxu0 %v386_v12 }
  0x15   : > { %389 = vmatpush3.bf16.msra.mxu0 %v386_v12 }
  0x18   : > { %372 = vmatmul.mubr.msk.f32.vlgmr.msra.gmra.mrb[0].mxu0 %vm188_vm0, %v172_v13 }
  0xeb   : > { %v373_v15 = vpop.f32.mrb[0].mxu0 }
  0xec   : > { %v267_v16 = vadd.f32 %v373_v15, %v338_v14  ;;  %v261_v17 = vpop.f32.mrb[1].mxu0 }
  0xed   : > { %v262_v18 = vadd.f32 %v338_v14, %v261_v17 }
  0xee   : > { %273 = vst.msk [vmem:[%s170_s11 + $0x8] sm:$0xf] %vm272_vm1, %v267_v16 }
  0xef   : > { %271 = vst.msk [vmem:[%s170_s11] sm:$0xff] %vm270_vm2, %v262_v18 }
  0xf0 PF: > { %s13_s12 = sadd.s32 1, %s404_s12  }
  0xf1   : > { %p10_p4 = scmp.ge.s32.totalorder %s13_s12, 4  }
  0xf3   :  { %12 = sbr.rel (!%p10_p4) target bundleno = 1 (0x1), region = 62 }

// kernel: mae_forward.8
= control target key start
LH: loop header
LB: loop body
LE: loop exit
PB: predicated region body
PF: predicated region fallthrough
CT: control target
= control target key end

     0   :  { %s2304_s25 = smov 0   ;;  %s2306_s26 = smov 0   ;;  %s2612_s0 = inlined_call_operand.vmem [shape: f32[2,16,64], index: 0, kind: input, shape index: {}]   ;;  %s2613_s1 = inlined_call_operand.vmem [shape: f32[1,1,64], index: 1, kind: input, shape index: {}]   ;;  %s2614_s2 = inlined_call_operand.vmem [shape: f32[1,1,64], index: 2, kind: input, shape index: {}]   ;;  %s2615_s3 = inlined_call_operand.vmem [shape: f32[1,64,96], index: 3, kind: input, shape index: {}]   ;;  %s2616_s4 = inlined_call_operand.vmem [shape: f32[1,1,96], index: 4, kind: input, shape index: {}]   ;;  %s2617_s5 = inlined_call_operand.vmem [shape: f32[1,32,64], index: 5, kind: input, shape index: {}]   ;;  %s2618_s6 = inlined_call_operand.vmem [shape: f32[1,1,64], index: 6, kind: input, shape index: {}]   ;;  %s2619_s7 = inlined_call_operand.vmem [shape: f32[1,1,64], index: 7, kind: input, shape index: {}]   ;;  %s2620_s8 = inlined_call_operand.vmem [shape: f32[1,1,64], index: 8, kind: input, shape index: {}]   ;;  %s2621_s9 = inlined_call_operand.vmem [shape: f32[1,64,256], index: 9, kind: input, shape index: {}]   ;;  %s2622_s10 = inlined_call_operand.vmem [shape: f32[1,1,256], index: 10, kind: input, shape index: {}]   ;;  %s2623_s11 = inlined_call_operand.vmem [shape: f32[1,256,64], index: 11, kind: input, shape index: {}]   ;;  %s2624_s12 = inlined_call_operand.vmem [shape: f32[1,1,64], index: 12, kind: input, shape index: {}]   ;;  %s2625_s13 = inlined_call_operand.vmem [shape: f32[2,16,64], index: 13, kind: output, shape index: {}]  }
   0x1   :  { %s2308_s27 = smov 0  }
   0x2 LB: > { %s35_s28 = sadd.s32 1, %s2221_s26  ;;  %p1866_p0 = scmp.ge.s32.totalorder %s2225_s27, 1  ;;  %s2225_s27 = sphi %s2308_s27, %s23_s27   ;;  %s2221_s26 = sphi %s2306_s26, %s2627_s26   ;;  %s2217_s25 = sphi %s2304_s25, %s2626_s25  }
   0x3   : > { %p37_p1 = scmp.ge.s32.totalorder %s35_s28, 2  ;;  %p504_p2 = scmp.lt.s32.totalorder %s2225_s27, 3 }
   0x5   : > { %s2629_s28 = smov (%p37_p1, %s35_s28), 0  ;;  %p505_p3 = pnand %p1866_p0, %p504_p2 }
   0x6   : > { %p593_p4 = scmp.lt.s32.totalorder (!%p505_p3), %s2217_s25, 1  ;;  %vm654_vm0 = vcmask (!%p505_p3), 523264   ;;  %v705_v16 = vld [vmem:[%s2615_s3] sm:$0xff] (!%p505_p3)  ;;  %v706_v17 = vld [vmem:[%s2615_s3 + $0x8] sm:$0xff] (!%p505_p3)  ;;  %v707_v19 = vld [vmem:[%s2615_s3 + $0x10] sm:$0xff] (!%p505_p3)  ;;  %vm807_vm1 = vcmask (!%p505_p3), 130048  }
   0x7   : > { %508 = sbr.rel (%p505_p3) target bundleno = 2558 (0x9fe), region = 72  ;;  %v2028_v18 = vpack.c.bf16 (!%p505_p3), %v706_v17, %v705_v16  ;;  %v708_v20 = vld [vmem:[%s2615_s3 + $0x18] sm:$0xff] (!%p505_p3)  ;;  %v709_v21 = vld [vmem:[%s2615_s3 + $0x20] sm:$0xff] (!%p505_p3)  ;;  %v710_v23 = vld [vmem:[%s2615_s3 + $0x28] sm:$0xff] (!%p505_p3)  ;;  %s2227_s14 = smov (!%p505_p3), 80   ;;  %vm1218_vm3 = vcmask (!%p505_p3), 261120  }
   0x8   : > { %v2032_v22 = vpack.c.bf16 (!%p505_p3), %v708_v20, %v707_v19  ;;  %v2036_v24 = vpack.c.bf16 (!%p505_p3), %v710_v23, %v709_v21  ;;  %v711_v25 = vld [vmem:[%s2615_s3 + $0x30] sm:$0xff] (!%p505_p3)  ;;  %v712_v26 = vld [vmem:[%s2615_s3 + $0x38] sm:$0xff] (!%p505_p3)  ;;  %v1871_v35 = vld [vmem:[%s2613_s1] ss:$0 sm:$0xff] (!%p505_p3)  ;;  %s2229_s16 = smov (!%p505_p3), 112   ;;  %s2230_s17 = smov (!%p505_p3), 48  }
   0x9   : > { %2029 = vmatprep.subr.bf16.mxu1 (!%p505_p3), %v2028_v18  ;;  %v2040_v27 = vpack.c.bf16 (!%p505_p3), %v712_v26, %v711_v25  ;;  %v1872_v37 = vld [vmem:[%s2614_s2] ss:$0 sm:$0xff] (!%p505_p3)  ;;  %vm2045_vm2 = vmpackc.low (!%p505_p3), %vm807_vm1, %vm807_vm1  ;;  %s2231_s18 = smov (!%p505_p3), 64  }
   0xa   : > { %2031 = vmatpush3.bf16.msra.mxu1 (!%p505_p3), %v2028_v18  ;;  %v1873_v44 = vld [vmem:[%s2616_s4] ss:$0 sm:$0xff] (!%p505_p3) }
   0xb   : > { %2033 = vmatprep.subr.bf16.mxu1 (!%p505_p3), %v2032_v22 }
   0xe   : > { %s2631_s25 = smov (!%p593_p4, %s2217_s25), 1  ;;  %2035 = vmatpush3.bf16.msra.mxu1 %v2032_v22 }
   0xf   : > { %s1898_s29 = sshll.u32 %s2631_s25, 4  ;;  %2037 = vmatprep.subr.bf16.mxu1 %v2036_v24 }
  0x10   : > { %s597_s15 = scalar_lea.vmem %s2612_s0, %s1898_s29 }
  0x11   : > { %v652_v0 = vld [vmem:[%s597_s15] sm:$0xff]  ;;  %v653_v1 = vld [vmem:[%s597_s15 + $0x8] sm:$0xff]  ;;  %s2228_s15 = smov 96  }
  0x12   : > { %655 = vst.msk [vmem:[#allocation2] sm:$0xff] %vm654_vm0, %v652_v0  ;;  %656 = vst.msk [vmem:[#allocation2 + $0x8] sm:$0xff] %vm654_vm0, %v653_v1  ;;  %2039 = vmatpush3.bf16.msra.mxu1 %v2036_v24 }
  0x13   : > { %2041 = vmatprep.subr.bf16.mxu1 %v2040_v27 }
  0x16   : > { %2043 = vmatpush3.bf16.msra.mxu1 %v2040_v27 }
  0x19   : > { %v2332_v2 = vld [vmem:[#allocation2] sm:$0xff]  ;;  %v2334_v3 = vld [vmem:[#allocation2 + $0x8] sm:$0xff] }
  0x1a   : > { %v662_v4 = vsel %vm654_vm0, %v2332_v2, 0.0  ;;  %v665_v5 = vsel %vm654_vm0, %v2334_v3, 0.0 }
  0x1b   : > { %663 = vadd.xlane.f32.xlu0 %v662_v4 }
  0x1f   : > { %666 = vadd.xlane.f32.xlu0 %v665_v5 }
  0xa8   : > { %v664_v6 = vpop.xlane.xlu0 %663 }
  0xa9   : > { %v669_v7 = vmul.f32 0.015625, %v664_v6 }
  0xab   : > { %v671_v8 = vsub.f32 %v2332_v2, %v669_v7 }
  0xac   : > { %v667_v9 = vpop.xlane.xlu0 %666 }
  0xad   : > { %v670_v10 = vmul.f32 0.015625, %v667_v9  ;;  %v673_v11 = vmul.f32 %v671_v8, %v671_v8 }
  0xaf   : > { %v672_v12 = vsub.f32 %v2334_v3, %v670_v10  ;;  %v675_v13 = vsel %vm654_vm0, %v673_v11, 0.0 }
  0xb0   : > { %676 = vadd.xlane.f32.xlu1 %v675_v13 }
  0xb1   : > { %v674_v14 = vmul.f32 %v672_v12, %v672_v12 }
  0xb3   : > { %v678_v15 = vsel %vm654_vm0, %v674_v14, 0.0 }
  0xb4   : > { %679 = vadd.xlane.f32.xlu1 %v678_v15 }
 0x13d   : > { %v677_v28 = vpop.xlane.xlu1 %676 }
 0x13e   : > { %v681_v29 = vmul.f32 0.015625, %v677_v28 }
 0x140   : > { %v683_v30 = vadd.f32 1e-05, %v681_v29 }
 0x141   : > { %v680_v31 = vpop.xlane.xlu1 %679 }
 0x142   : > { %2171 = vrsqrt.f32 %v683_v30  ;;  %v682_v32 = vmul.f32 0.015625, %v680_v31 }
 0x144   : > { %v684_v33 = vadd.f32 1e-05, %v682_v32 }
 0x146   : > { %2173 = vrsqrt.f32 %v684_v33 }
 0x14c   : > { %v2172_v34 = vpop.eup %2171 }
 0x14d   : > { %v687_v36 = vmul.f32 %v2172_v34, %v671_v8 }
 0x14f   : > { %v695_v38 = vmul.f32 %v1871_v35, %v687_v36 }
 0x150   : > { %v2174_v39 = vpop.eup %2173 }
 0x151   : > { %v688_v40 = vmul.f32 %v2174_v39, %v672_v12  ;;  %v703_v41 = vadd.f32 %v1872_v37, %v695_v38 }
 0x153   : > { %v696_v42 = vmul.f32 %v1871_v35, %v688_v40  ;;  %1986 = vmatprep.mubr.msk.f32.mxu1 %vm654_vm0, %v703_v41 }
 0x155   : > { %v704_v43 = vadd.f32 %v1872_v37, %v696_v42 }
 0x157   : > { %1987 = vmatmul.mubr.msk.f32.vlgmr.msra.gmra.mrb[0].mxu1 %vm654_vm0, %v704_v43 }
 0x22a   : > { %v1988_v45 = vpop.f32.mrb[0].mxu1 }
 0x22b   : > { %v798_v46 = vadd.f32 %v1988_v45, %v1873_v44  ;;  %v792_v47 = vpop.f32.mrb[1].mxu1 }
 0x22c   : > { %v793_v48 = vadd.f32 %v1873_v44, %v792_v47 }
 0x22e   : > { %1993 = vmatprep.mubr.msk.f32.mxu1 %vm807_vm1, %v793_v48  ;;  %v2380_v49 = vpack.i.bf16 %v798_v46, %v793_v48 }
 0x230   : > { %2157 = vrot.lane.b32.xlu1 %v2380_v49, %s2227_s14  ;;  %2152 = vrot.lane.b32.xlu0 %v2380_v49, %s2228_s15  ;;  %s2232_s15 = smov 16  }
 0x234   : > { %1002 = vrot.lane.b32.xlu1 %v793_v48, %s2229_s16 }
 0x238   : > { %1004 = vrot.lane.b32.xlu1 %v798_v46, %s2229_s16  ;;  %s647_s16 = scalar_lea.vmem %s2625_s13, %s1898_s29 }
 0x2a2   : > { %v2158_v50 = vpop.permute.xlu1 %2157  ;;  %v2153_v51 = vpop.permute.xlu0 %2152 }
 0x2a3   : > { %v2160_v52 = vunpack.i.h.bf16 %v2158_v50  ;;  %v2159_v53 = vunpack.i.l.bf16 %v2158_v50  ;;  %v2155_v54 = vunpack.i.h.bf16 %v2153_v51  ;;  %v2154_v55 = vunpack.i.l.bf16 %v2153_v51  ;;  %v1214_v50 = vld [vmem:[%s2617_s5] sm:$0xff]  ;;  %v1215_v51 = vld [vmem:[%s2617_s5 + $0x8] sm:$0xff] }
 0x2a5   : > { %v2044_v56 = vpack.c.bf16 %v2155_v54, %v2154_v55  ;;  %v2054_v57 = vpack.c.bf16 %v2160_v52, %v2159_v53  ;;  %v2064_v52 = vpack.c.bf16 %v1215_v51, %v1214_v50  ;;  %v1216_v53 = vld [vmem:[%s2617_s5 + $0x10] sm:$0xff]  ;;  %v1217_v54 = vld [vmem:[%s2617_s5 + $0x18] sm:$0xff]  ;;  %v1891_v51 = vld [vmem:[%s2619_s7] ss:$0 sm:$0xff] }
 0x2a6   : > { %v1003_v58 = vpop.permute.xlu1 %1002  ;;  %v2068_v55 = vpack.c.bf16 %v1217_v54, %v1216_v53  ;;  %v1892_v53 = vld [vmem:[%s2620_s8] ss:$0 sm:$0xff] }
 0x2a7   : > { %2046 = vmatprep.subr.msk.bf16.mxu1 %vm2045_vm2, %v2044_v56 }
 0x2a8   : > { %2049 = vmatpush3.bf16.xpose.msk.msra.mxu1 %vm2045_vm2, %v2044_v56 }
 0x2a9   : > { %2056 = vmatprep.subr.msk.bf16.mxu1 %vm2045_vm2, %v2054_v57 }
 0x2aa   : > { %v1005_v59 = vpop.permute.xlu1 %1004 }
 0x2af   : > { %1994 = vmatmul.mubr.msk.f32.vlgmr.msra.gmra.mrb[2].mxu1 %vm807_vm1, %v798_v46 }
 0x2b0   : > { %2059 = vmatpush3.bf16.xpose.msk.msra.mxu1 %vm2045_vm2, %v2054_v57  ;;  %2007 = vmatprep.mubr.msk.f32.mxu1 %vm807_vm1, %v1003_v58 }
 0x2b7   : > { %2008 = vmatmul.mubr.msk.f32.vlgmr.msra.gmra.mrb[4].mxu1 %vm807_vm1, %v1005_v59 }
 0x382   : > { %v1995_v60 = vpop.f32.mrb[2].mxu1 }
 0x383   : > { %v892_v61 = vmul.f32 0.25, %v1995_v60  ;;  %v882_v62 = vpop.f32.mrb[3].mxu1 }
 0x384   : > { %v891_v63 = vmul.f32 0.25, %v882_v62 }
 0x385   : > { %v896_v0 = vsel %vm807_vm1, %v892_v61, -inf }
 0x386   : > { %897 = vmax.xlane.f32.xlu1 %v896_v0  ;;  %v893_v1 = vsel %vm807_vm1, %v891_v63, -inf }
 0x387   : > { %894 = vmax.xlane.f32.xlu0 %v893_v1  ;;  %v1890_v1 = vld [vmem:[%s2618_s6] ss:$0 sm:$0xff] }
 0x38a   : > { %v2009_v4 = vpop.f32.mrb[4].mxu1 }
 0x38b   : > { %v1084_v5 = vpop.f32.mrb[5].mxu1  ;;  %v1094_v7 = vmul.f32 0.25, %v2009_v4 }
 0x38c   : > { %v1093_v6 = vmul.f32 0.25, %v1084_v5 }
 0x38d   : > { %v1098_v9 = vsel %vm807_vm1, %v1094_v7, -inf }
 0x38e   : > { %v1095_v8 = vsel %vm807_vm1, %v1093_v6, -inf }
 0x38f   : > { %1096 = vmax.xlane.f32.xlu0 %v1095_v8 }
 0x393   : > { %1099 = vmax.xlane.f32.xlu0 %v1098_v9 }
 0x413   : > { %v898_v10 = vpop.xlane.xlu1 %897 }
 0x414   : > { %v900_v11 = vsub.f32 %v892_v61, %v898_v10  ;;  %v895_v12 = vpop.xlane.xlu0 %894 }
 0x415   : > { %v899_v13 = vsub.f32 %v891_v63, %v895_v12 }
 0x416   : > { %v903_v14 = vmul.f32 1.442695, %v900_v11 }
 0x417   : > { %v901_v15 = vmul.f32 1.442695, %v899_v13 }
 0x418   : > { %2175 = vpow2.f32 %v903_v14 }
 0x419   : > { %2177 = vpow2.f32 %v901_v15 }
 0x41c   : > { %v1097_v16 = vpop.xlane.xlu0 %1096 }
 0x41d   : > { %v1101_v17 = vsub.f32 %v1093_v6, %v1097_v16 }
 0x41f   : > { %v1103_v18 = vmul.f32 1.442695, %v1101_v17 }
 0x420   : > { %v1100_v19 = vpop.xlane.xlu0 %1099 }
 0x421   : > { %2179 = vpow2.f32 %v1103_v18  ;;  %v1102_v20 = vsub.f32 %v1094_v7, %v1100_v19  ;;  %v1356_v19 = vld [vmem:[%s2621_s9 + $0x8] sm:$0xff] }
 0x422   : > { %v2176_v21 = vpop.eup %2175 }
 0x423   : > { %v2178_v22 = vpop.eup %2177  ;;  %v1105_v23 = vmul.f32 1.442695, %v1102_v20  ;;  %v908_v24 = vsel %vm807_vm1, %v2176_v21, 0.0  ;;  %v1358_v20 = vld [vmem:[%s2621_s9 + $0x18] sm:$0xff] }
 0x424   : > { %909 = vadd.xlane.f32.xlu1 %v908_v24  ;;  %v905_v25 = vsel %vm807_vm1, %v2178_v22, 0.0 }
 0x425   : > { %2181 = vpow2.f32 %v1105_v23  ;;  %906 = vadd.xlane.f32.xlu0 %v905_v25  ;;  %v1357_v23 = vld [vmem:[%s2621_s9 + $0x10] sm:$0xff]  ;;  %v1360_v25 = vld [vmem:[%s2621_s9 + $0x28] sm:$0xff] }
 0x42b   : > { %v2180_v26 = vpop.eup %2179 }
 0x42c   : > { %v1107_v27 = vsel %vm807_vm1, %v2180_v26, 0.0 }
 0x42d   : > { %1108 = vadd.xlane.f32.xlu0 %v1107_v27 }
 0x42f   : > { %v2182_v28 = vpop.eup %2181 }
 0x430   : > { %v1110_v29 = vsel %vm807_vm1, %v2182_v28, 0.0 }
 0x431   : > { %1111 = vadd.xlane.f32.xlu1 %v1110_v29  ;;  %v1361_v29 = vld [vmem:[%s2621_s9 + $0x30] sm:$0xff] }
 0x442   : > { %2167 = vrot.lane.b32.xlu1 %v2380_v49, %s2230_s17 }
 0x443   : > { %2162 = vrot.lane.b32.xlu0 %v2380_v49, %s2231_s18 }
 0x4b1   : > { %v910_v31 = vpop.xlane.xlu1 %909 }
 0x4b2   : > { %v907_v30 = vpop.xlane.xlu0 %906 }
 0x4b3   : > { %2183 = vrcp.f32 %v907_v30 }
 0x4b4   : > { %2185 = vrcp.f32 %v910_v31  ;;  %v1364_v31 = vld [vmem:[%s2621_s9 + $0x48] sm:$0xff] }
 0x4ba   : > { %v1109_v32 = vpop.xlane.xlu0 %1108 }
 0x4bb   : > { %2187 = vrcp.f32 %v1109_v32  ;;  %v1366_v32 = vld [vmem:[%s2621_s9 + $0x58] sm:$0xff] }
 0x4bd   : > { %v2184_v33 = vpop.eup %2183 }
 0x4be   : > { %v1112_v34 = vpop.xlane.xlu1 %1111  ;;  %v2163_v35 = vpop.permute.xlu0 %2162  ;;  %v913_v36 = vmul.f32 %v2184_v33, %v2178_v22  ;;  %v1355_v22 = vld [vmem:[%s2621_s9] sm:$0xff]  ;;  %v2080_v33 = vpack.c.bf16 %v1366_v32, %v1364_v31  ;;  %v1513_v32 = vld [vmem:[%s2623_s11 + $0x58] sm:$0xff] }
 0x4bf   : > { %2189 = vrcp.f32 %v1112_v34  ;;  %v2165_v37 = vunpack.i.h.bf16 %v2163_v35  ;;  %v2164_v38 = vunpack.i.l.bf16 %v2163_v35  ;;  %v2186_v40 = vpop.eup %2185  ;;  %v2074_v24 = vpack.c.bf16 %v1357_v23, %v1355_v22  ;;  %v1363_v34 = vld [vmem:[%s2621_s9 + $0x40] sm:$0xff]  ;;  %v1365_v35 = vld [vmem:[%s2621_s9 + $0x50] sm:$0xff]  ;;  %v1527_v23 = vld [vmem:[%s2623_s11 + $0xc8] sm:$0xff] }
 0x4c0   : > { %2000 = vmatprep.mubr.msk.f32.mxu0 %vm807_vm1, %v913_v36  ;;  %v914_v46 = vmul.f32 %v2186_v40, %v2176_v21  ;;  %v2072_v21 = vpack.c.bf16 %v1358_v20, %v1356_v19  ;;  %v2082_v36 = vpack.c.bf16 %v1365_v35, %v1363_v34  ;;  %v1367_v40 = vld [vmem:[%s2621_s9 + $0x60] sm:$0xff]  ;;  %v1508_v19 = vld [vmem:[%s2623_s11 + $0x30] sm:$0xff]  ;;  %v1509_v20 = vld [vmem:[%s2623_s11 + $0x38] sm:$0xff] }
 0x4c1   : > { %v2050_v39 = vpack.c.bf16 %v2165_v37, %v2164_v38  ;;  %v1368_v37 = vld [vmem:[%s2621_s9 + $0x68] sm:$0xff]  ;;  %v1370_v38 = vld [vmem:[%s2621_s9 + $0x78] sm:$0xff]  ;;  %v1526_v22 = vld [vmem:[%s2623_s11 + $0xc0] sm:$0xff] }
 0x4c2   : > { %v2168_v41 = vpop.permute.xlu1 %2167  ;;  %2073 = vmatprep.subr.bf16.mxu1 %v2072_v21  ;;  %v2102_v21 = vpack.c.bf16 %v1509_v20, %v1508_v19  ;;  %v1531_v34 = vld [vmem:[%s2623_s11 + $0xe8] sm:$0xff] }
 0x4c3   : > { %v2170_v42 = vunpack.i.h.bf16 %v2168_v41  ;;  %v2169_v43 = vunpack.i.l.bf16 %v2168_v41  ;;  %2051 = vmatprep.subr.bf16.mxu0 %v2050_v39  ;;  %2075 = vmatpush1.bf16.msra.mxu1 %v2074_v24  ;;  %v1369_v41 = vld [vmem:[%s2621_s9 + $0x70] sm:$0xff]  ;;  %v2104_v24 = vpack.c.bf16 %v1527_v23, %v1526_v22 }
 0x4c4   : > { %2053 = vmatpush3.bf16.msra.mxu0 %v2050_v39  ;;  %v2084_v39 = vpack.c.bf16 %v1370_v38, %v1368_v37  ;;  %v1514_v37 = vld [vmem:[%s2623_s11 + $0x60] sm:$0xff]  ;;  %v1515_v38 = vld [vmem:[%s2623_s11 + $0x68] sm:$0xff] }
 0x4c5   : > { %v2188_v44 = vpop.eup %2187  ;;  %v2060_v45 = vpack.c.bf16 %v2170_v42, %v2169_v43  ;;  %v2086_v42 = vpack.c.bf16 %v1369_v41, %v1367_v40  ;;  %v2233_v43 = vmov 0.0   ;;  %v1533_v40 = vld [vmem:[%s2623_s11 + $0xf8] sm:$0xff]  ;;  %v2114_v41 = vpack.c.bf16 %v1515_v38, %v1514_v37  ;;  %v1895_v38 = vld [vmem:[%s2624_s12] ss:$0 sm:$0xff] }
 0x4c6   : > { %v1115_v47 = vmul.f32 %v2188_v44, %v2180_v26  ;;  %v1362_v26 = vld [vmem:[%s2621_s9 + $0x38] sm:$0xff]  ;;  %1453 = vmatprep.mubr.f32.mxu1 %v2233_v43 }
 0x4c7   : > { %2001 = vmatmul.mubr.msk.f32.vlgmr.msra.gmra.mrb[0].mxu0 %vm807_vm1, %v914_v46  ;;  %2061 = vmatprep.subr.bf16.mxu0 %v2060_v45  ;;  %v2076_v27 = vpack.c.bf16 %v1362_v26, %v1360_v25  ;;  %v1510_v25 = vld [vmem:[%s2623_s11 + $0x40] sm:$0xff]  ;;  %v1511_v26 = vld [vmem:[%s2623_s11 + $0x48] sm:$0xff] }
 0x4c8   : > { %2063 = vmatpush3.bf16.msra.mxu0 %v2060_v45  ;;  %2014 = vmatprep.mubr.msk.f32.mxu0 %vm807_vm1, %v1115_v47 }
 0x4c9   : > { %v2190_v48 = vpop.eup %2189  ;;  %2065 = vmatprep.subr.bf16.mxu0 %v2064_v52  ;;  %2077 = vmatprep.subr.bf16.mxu1 %v2076_v27  ;;  %v2106_v27 = vpack.c.bf16 %v1511_v26, %v1510_v25 }
 0x4ca   : > { %v1116_v49 = vmul.f32 %v2190_v48, %v2182_v28  ;;  %v1359_v28 = vld [vmem:[%s2621_s9 + $0x20] sm:$0xff] }
 0x4cb   : > { %v2078_v30 = vpack.c.bf16 %v1361_v29, %v1359_v28  ;;  %v1528_v28 = vld [vmem:[%s2623_s11 + $0xd0] sm:$0xff]  ;;  %v1529_v29 = vld [vmem:[%s2623_s11 + $0xd8] sm:$0xff] }
 0x4cc   : > { %2015 = vmatmul.mubr.msk.f32.vlgmr.msra.gmra.mrb[2].mxu0 %vm807_vm1, %v1116_v49  ;;  %v2108_v31 = vpack.c.bf16 %v1529_v29, %v1528_v28 }
 0x4cd   : > { %2067 = vmatpush3.bf16.msra.mxu0 %v2064_v52  ;;  %2079 = vmatpush1.bf16.msra.mxu1 %v2078_v30  ;;  %v1512_v30 = vld [vmem:[%s2623_s11 + $0x50] sm:$0xff] }
 0x4ce   : > { %2069 = vmatprep.subr.bf16.mxu0 %v2068_v55  ;;  %2081 = vmatprep.subr.bf16.mxu1 %v2080_v33  ;;  %v1530_v33 = vld [vmem:[%s2623_s11 + $0xe0] sm:$0xff]  ;;  %v2110_v35 = vpack.c.bf16 %v1513_v32, %v1512_v30 }
 0x4d1   : > { %2071 = vmatpush3.bf16.msra.mxu0 %v2068_v55  ;;  %2083 = vmatpush1.bf16.msra.mxu1 %v2082_v36  ;;  %v2112_v36 = vpack.c.bf16 %v1531_v34, %v1530_v33 }
 0x4d2   : > { %2085 = vmatprep.subr.bf16.mxu1 %v2084_v39  ;;  %v1532_v39 = vld [vmem:[%s2623_s11 + $0xf0] sm:$0xff] }
 0x4d5   : > { %2087 = vmatpush1.bf16.msra.mxu1 %v2086_v42  ;;  %v2116_v42 = vpack.c.bf16 %v1533_v40, %v1532_v39 }
 0x59a   : > { %v2002_v56 = vpop.f32.mrb[0].mxu0 }
 0x59b   : > { %v993_v57 = vpop.f32.mrb[1].mxu0 }
 0x59f   : > { %v2016_v58 = vpop.f32.mrb[2].mxu0 }
 0x5a0   : > { %v1195_v59 = vpop.f32.mrb[3].mxu0 }
 0x5a1   : > { %1206 = vrot.lane.b32.xlu1 %v1195_v59, %s2232_s15 }
 0x5a5   : > { %1208 = vrot.lane.b32.xlu1 %v2016_v58, %s2232_s15 }
 0x613   : > { %v1207_v60 = vpop.permute.xlu1 %1206 }
 0x614   : > { %v1212_v61 = vsel %vm807_vm1, %v993_v57, %v1207_v60  ;;  %v1518_v60 = vld [vmem:[%s2623_s11 + $0x80] sm:$0xff] }
 0x615   : > { %2025 = vmatprep.mubr.msk.f32.mxu0 %vm1218_vm3, %v1212_v61  ;;  %v1519_v61 = vld [vmem:[%s2623_s11 + $0x88] sm:$0xff] }
 0x617   : > { %v1209_v62 = vpop.permute.xlu1 %1208 }
 0x618   : > { %v1213_v63 = vsel %vm807_vm1, %v2002_v56, %v1209_v62  ;;  %v2088_v62 = vpack.c.bf16 %v1519_v61, %v1518_v60 }
 0x619   : > { %2026 = vmatmul.mubr.msk.f32.vlgmr.msra.gmra.mrb[4].mxu0 %vm1218_vm3, %v1213_v63  ;;  %v1502_v63 = vld [vmem:[%s2623_s11] sm:$0xff] }
 0x61a   : > { %2089 = vmatprep.subr.bf16.mxu0 %v2088_v62 }
 0x6ec   : > { %v2027_v0 = vpop.f32.mrb[4].mxu0 }
 0x6ed   : > { %v1301_v4 = vadd.f32 %v2027_v0, %v2334_v3  ;;  %v1291_v5 = vpop.f32.mrb[5].mxu0  ;;  %v1503_v0 = vld [vmem:[%s2623_s11 + $0x8] sm:$0xff] }
 0x6ee   : > { %v1300_v6 = vadd.f32 %v1291_v5, %v2332_v2  ;;  %v1521_v5 = vld [vmem:[%s2623_s11 + $0x98] sm:$0xff] }
 0x6ef   : > { %v2422_v7 = vadd.f32 %v1890_v1, %v1301_v4  ;;  %v1520_v4 = vld [vmem:[%s2623_s11 + $0x90] sm:$0xff] }
 0x6f0   : > { %v2424_v8 = vadd.f32 %v1890_v1, %v1300_v6  ;;  %v2090_v1 = vpack.c.bf16 %v1503_v0, %v1502_v63  ;;  %v2092_v6 = vpack.c.bf16 %v1521_v5, %v1520_v4 }
 0x6f1   : > { %v1316_v9 = vsel %vm654_vm0, %v2422_v7, 0.0 }
 0x6f2   : > { %1317 = vadd.xlane.f32.xlu1 %v1316_v9  ;;  %v1313_v10 = vsel %vm654_vm0, %v2424_v8, 0.0  ;;  %2091 = vmatpush3.bf16.msra.mxu0 %v2090_v1  ;;  %v1504_v9 = vld [vmem:[%s2623_s11 + $0x10] sm:$0xff] }
 0x6f3   : > { %1314 = vadd.xlane.f32.xlu0 %v1313_v10  ;;  %v1505_v10 = vld [vmem:[%s2623_s11 + $0x18] sm:$0xff]  ;;  %2093 = vmatprep.subr.bf16.mxu0 %v2092_v6 }
 0x77f   : > { %v1318_v11 = vpop.xlane.xlu1 %1317 }
 0x780   : > { %v1320_v12 = vmul.f32 0.015625, %v1318_v11  ;;  %v1315_v13 = vpop.xlane.xlu0 %1314  ;;  %v2094_v11 = vpack.c.bf16 %v1505_v10, %v1504_v9 }
 0x781   : > { %v1319_v14 = vmul.f32 0.015625, %v1315_v13  ;;  %v1523_v13 = vld [vmem:[%s2623_s11 + $0xa8] sm:$0xff] }
 0x782   : > { %v1322_v3 = vsub.f32 %v2422_v7, %v1320_v12  ;;  %2095 = vmatpush3.bf16.msra.mxu0 %v2094_v11  ;;  %v1522_v12 = vld [vmem:[%s2623_s11 + $0xa0] sm:$0xff] }
 0x783   : > { %v1321_v2 = vsub.f32 %v2424_v8, %v1319_v14  ;;  %v2096_v14 = vpack.c.bf16 %v1523_v13, %v1522_v12 }
 0x784   : > { %v1324_v17 = vmul.f32 %v1322_v3, %v1322_v3 }
 0x785   : > { %v1323_v15 = vmul.f32 %v1321_v2, %v1321_v2  ;;  %2097 = vmatprep.subr.bf16.mxu0 %v2096_v14 }
 0x786   : > { %v1328_v18 = vsel %vm654_vm0, %v1324_v17, 0.0  ;;  %v1525_v17 = vld [vmem:[%s2623_s11 + $0xb8] sm:$0xff] }
 0x787   : > { %v1325_v16 = vsel %vm654_vm0, %v1323_v15, 0.0 }
 0x788   : > { %1326 = vadd.xlane.f32.xlu0 %v1325_v16  ;;  %v1524_v16 = vld [vmem:[%s2623_s11 + $0xb0] sm:$0xff] }
 0x78c   : > { %1329 = vadd.xlane.f32.xlu0 %v1328_v18  ;;  %v2100_v18 = vpack.c.bf16 %v1525_v17, %v1524_v16 }
 0x815   : > { %v1327_v44 = vpop.xlane.xlu0 %1326 }
 0x816   : > { %v1331_v45 = vmul.f32 0.015625, %v1327_v44  ;;  %v1517_v44 = vld [vmem:[%s2623_s11 + $0x78] sm:$0xff] }
 0x818   : > { %v1333_v46 = vadd.f32 1e-05, %v1331_v45 }
 0x819   : > { %v1330_v47 = vpop.xlane.xlu0 %1329 }
 0x81a   : > { %2191 = vrsqrt.f32 %v1333_v46  ;;  %v1332_v48 = vmul.f32 0.015625, %v1330_v47  ;;  %v1373_v46 = vlaneseq }
 0x81c   : > { %v1334_v49 = vadd.f32 1e-05, %v1332_v48  ;;  %v1374_v47 = vshrl.u32 %v1373_v46, 7 }
 0x81e   : > { %2193 = vrsqrt.f32 %v1334_v49  ;;  %v1375_v48 = vsub.s32 0, %v1374_v47  ;;  %v1371_v49 = vld [vmem:[%s2622_s10] sm:$0x3] }
 0x824   : > { %v2192_v50 = vpop.eup %2191 }
 0x825   : > { %v1337_v52 = vmul.f32 %v2192_v50, %v1321_v2  ;;  %v1507_v2 = vld [vmem:[%s2623_s11 + $0x28] sm:$0xff]  ;;  %v1379_v50 = vsub.s32 1, %v1374_v47 }
 0x827   : > { %v1345_v54 = vmul.f32 %v1891_v51, %v1337_v52  ;;  %v1380_v52 = vrot.slane %v1371_v49, %v1379_v50 }
 0x828   : > { %v2194_v55 = vpop.eup %2193 }
 0x829   : > { %v1353_v56 = vadd.f32 %v1892_v53, %v1345_v54  ;;  %v1338_v57 = vmul.f32 %v2194_v55, %v1322_v3  ;;  %v1506_v3 = vld [vmem:[%s2623_s11 + $0x20] sm:$0xff] }
 0x82a   : > { %v2098_v15 = vpack.c.bf16 %v1507_v2, %v1506_v3 }
 0x82b   : > { %1893 = vmatmul.mubr.msk.f32.vlgmr.msra.gmra.mrb[6].mxu1 %vm654_vm0, %v1353_v56  ;;  %v1346_v58 = vmul.f32 %v1891_v51, %v1338_v57  ;;  %v1376_v51 = vrot.slane %v1371_v49, %v1375_v48 }
 0x82c   : > { %1459 = vmatprep.mubr.f32.mxu1 %v2233_v43  ;;  %2099 = vmatpush3.bf16.msra.mxu0 %v2098_v15  ;;  %v1516_v43 = vld [vmem:[%s2623_s11 + $0x70] sm:$0xff] }
 0x82d   : > { %v1354_v59 = vadd.f32 %v1892_v53, %v1346_v58  ;;  %2101 = vmatprep.subr.bf16.mxu0 %v2100_v18  ;;  %v2118_v45 = vpack.c.bf16 %v1517_v44, %v1516_v43 }
 0x82f   : > { %1894 = vmatmul.mubr.msk.f32.gmra.mrb[8].mxu1 %vm654_vm0, %v1354_v59 }
 0x830   : > { %2103 = vmatpush3.bf16.msra.mxu0 %v2102_v21 }
 0x831   : > { %2105 = vmatprep.subr.bf16.mxu0 %v2104_v24 }
 0x834   : > { %2107 = vmatpush3.bf16.msra.mxu0 %v2106_v27 }
 0x835   : > { %2109 = vmatprep.subr.bf16.mxu0 %v2108_v31 }
 0x838   : > { %2111 = vmatpush3.bf16.msra.mxu0 %v2110_v35 }
 0x839   : > { %2113 = vmatprep.subr.bf16.mxu0 %v2112_v36 }
 0x83c   : > { %2115 = vmatpush3.bf16.msra.mxu0 %v2114_v41 }
 0x83d   : > { %2117 = vmatprep.subr.bf16.mxu0 %v2116_v42 }
 0x840   : > { %2119 = vmatpush3.bf16.msra.mxu0 %v2118_v45 }
 0x8fe   : > { %v1455_v53 = vpop.f32.mrb[6].mxu1 }
 0x8ff   : > { %v1456_v54 = vadd.f32 %v1455_v53, %v1376_v51  ;;  %v1457_v55 = vpop.f32.mrb[7].mxu1 }
 0x900   : > { %v1458_v56 = vadd.f32 %v1457_v55, %v1380_v52 }
 0x901   : > { %v1466_v57 = vmul.f32 %v1456_v54, %v1456_v54 }
 0x902   : > { %v1467_v58 = vmul.f32 %v1458_v56, %v1458_v56  ;;  %v1461_v59 = vpop.f32.mrb[8].mxu1 }
 0x903   : > { %v1470_v60 = vmul.f32 %v1466_v57, %v1456_v54  ;;  %v1462_v61 = vadd.f32 %v1461_v59, %v1376_v51  ;;  %v1463_v62 = vpop.f32.mrb[9].mxu1 }
 0x904   : > { %v1471_v63 = vmul.f32 %v1467_v58, %v1458_v56  ;;  %v1464_v0 = vadd.f32 %v1463_v62, %v1380_v52 }
 0x905   : > { %v1474_v1 = vmul.f32 0.044715, %v1470_v60  ;;  %v1468_v4 = vmul.f32 %v1462_v61, %v1462_v61 }
 0x906   : > { %v1475_v5 = vmul.f32 0.044715, %v1471_v63  ;;  %v1469_v6 = vmul.f32 %v1464_v0, %v1464_v0 }
 0x907   : > { %v1478_v9 = vadd.f32 %v1474_v1, %v1456_v54  ;;  %v1472_v10 = vmul.f32 %v1468_v4, %v1462_v61 }
 0x908   : > { %v1479_v11 = vadd.f32 %v1475_v5, %v1458_v56  ;;  %v1473_v12 = vmul.f32 %v1469_v6, %v1464_v0 }
 0x909   : > { %v1482_v13 = vmul.f32 0.7978846, %v1478_v9  ;;  %v1476_v14 = vmul.f32 0.044715, %v1472_v10 }
 0x90a   : > { %v1483_v3 = vmul.f32 0.7978846, %v1479_v11  ;;  %v1477_v2 = vmul.f32 0.044715, %v1473_v12 }
 0x90b   : > { %2195 = vtanh.f32 %v1482_v13  ;;  %v1480_v15 = vadd.f32 %v1476_v14, %v1462_v61 }
 0x90c   : > { %v1481_v16 = vadd.f32 %v1477_v2, %v1464_v0  ;;  %2197 = vtanh.f32 %v1483_v3 }
 0x90d   : > { %v1484_v17 = vmul.f32 0.7978846, %v1480_v15 }
 0x90e   : > { %v1485_v18 = vmul.f32 0.7978846, %v1481_v16 }
 0x90f   : > { %2199 = vtanh.f32 %v1484_v17 }
 0x910   : > { %2201 = vtanh.f32 %v1485_v18 }
 0x915   : > { %v2196_v19 = vpop.eup %2195 }
 0x916   : > { %v2198_v20 = vpop.eup %2197  ;;  %v1490_v21 = vadd.f32 1.0, %v2196_v19 }
 0x917   : > { %v1491_v22 = vadd.f32 1.0, %v2198_v20 }
 0x918   : > { %v1494_v23 = vmul.f32 0.5, %v1490_v21 }
 0x919   : > { %v2200_v24 = vpop.eup %2199  ;;  %v1495_v25 = vmul.f32 0.5, %v1491_v22 }
 0x91a   : > { %v2202_v26 = vpop.eup %2201  ;;  %v1492_v27 = vadd.f32 1.0, %v2200_v24  ;;  %v1498_v30 = vmul.f32 %v1494_v23, %v1456_v54 }
 0x91b   : > { %v1499_v28 = vmul.f32 %v1495_v25, %v1458_v56  ;;  %v1493_v29 = vadd.f32 1.0, %v2202_v26 }
 0x91c   : > { %v1496_v31 = vmul.f32 0.5, %v1492_v27 }
 0x91d   : > { %1598 = vmatprep.mubr.f32.mxu0 %v1499_v28  ;;  %v1497_v32 = vmul.f32 0.5, %v1493_v29 }
 0x91e   : > { %1599 = vmatmul.mubr.f32.vlgmr.msra.gmra.mrb[6].mxu0 %v1498_v30  ;;  %v1500_v34 = vmul.f32 %v1496_v31, %v1462_v61 }
 0x91f   : > { %v1501_v33 = vmul.f32 %v1497_v32, %v1464_v0 }
 0x921   : > { %1603 = vmatprep.mubr.f32.mxu0 %v1501_v33 }
 0x922   : > { %1604 = vmatmul.mubr.f32.gmra.mrb[8].mxu0 %v1500_v34 }
 0x9f1   : > { %v1964_v35 = vpop.f32.mrb[6].mxu0 }
 0x9f2   : > { %v1965_v36 = vpop.f32.mrb[7].mxu0 }
 0x9f3   : > { %v1966_v37 = vadd.f32 %v1965_v36, %v1964_v35 }
 0x9f5   : > { %v1609_v39 = vadd.f32 %v1966_v37, %v2424_v8  ;;  %v1967_v40 = vpop.f32.mrb[8].mxu0 }
 0x9f6   : > { %v1968_v41 = vpop.f32.mrb[9].mxu0 }
 0x9f7   : > { %v1618_v42 = vadd.f32 %v1895_v38, %v1609_v39  ;;  %v1969_v43 = vadd.f32 %v1968_v41, %v1967_v40 }
 0x9f9   : > { %1620 = vst.msk [vmem:[#allocation2] sm:$0xff] %vm654_vm0, %v1618_v42  ;;  %1625 = vst.msk [vmem:[%s647_s16] sm:$0xff] %vm654_vm0, %v1618_v42  ;;  %v1610_v44 = vadd.f32 %v1969_v43, %v2422_v7 }
 0x9fb   : > { %v1619_v45 = vadd.f32 %v1895_v38, %v1610_v44 }
 0x9fd   : > { %1621 = vst.msk [vmem:[#allocation2 + $0x8] sm:$0xff] %vm654_vm0, %v1619_v45  ;;  %1626 = vst.msk [vmem:[%s647_s16 + $0x8] sm:$0xff] %vm654_vm0, %v1619_v45 }
 0x9fe PF: > { %s23_s27 = sadd.s32 1, %s2225_s27   ;;  %s2626_s25 = smov %s2221_s26 }
 0x9ff   : > { %p20_p5 = scmp.ge.s32.totalorder %s23_s27, 4   ;;  %s2627_s26 = smov %s2629_s28 }
 0xa01   :  { %22 = sbr.rel (!%p20_p5) target bundleno = 2 (0x2), region = 146 }

</bundles_post_ra>
